<compile_context>
chip_gen: v7x
topology: tpu7x:2x2x1
jax: 0.10.0
libtpu: 0.0.40
codegen_flags: <defaults>
</compile_context>

<pallas_src>
import jax
import jax.numpy as jnp
from jax import lax
from jax.experimental import pallas as pl
from jax.experimental.pallas import tpu as pltpu
import numpy as np

HIDDEN = 50
INPUT = 3
OUTPUT = 3

# Padded sizes (lane/sublane friendly for f32).
B_PAD = 8          # sublane-aligned batch
H_PAD = 128        # lane-aligned hidden (per gate block)
I_PAD = 8          # contraction dim only needs sublane-8 alignment
O_PAD = 128        # lane-aligned output

# PyTorch gate blocks are [i, f, g, o]; kernel layout is [i, f, o, g] so the
# three sigmoid gates form one contiguous slab and tanh gets the trailing one.
GATE_ORDER = (0, 1, 3, 2)   # dst block k takes source block GATE_ORDER[k]


def lstm_kernel(x2d_ref, wih_ref, whh_ref, b_ref, wfc_ref, bfc_ref, out_ref,
                gx_sc):
    T = x2d_ref.shape[0] // B_PAD      # static
    H = H_PAD

    # ---- Hoisted input projection for all timesteps: one MXU matmul. ----
    # (T*B_PAD, I_PAD) @ (I_PAD, 4*H_PAD) + bias  -> VMEM scratch.
    gx_sc[...] = (jnp.dot(x2d_ref[...], wih_ref[...],
                          preferred_element_type=jnp.float32)
                  + b_ref[...])

    # ---- Serial recurrence: only h @ W_hh + cell math on the critical path. ----
    def step(t, carry):
        h, c = carry
        off = pl.multiple_of(t * B_PAD, B_PAD)
        gates = gx_sc[pl.ds(off, B_PAD), :] + jnp.dot(
            h, whh_ref[...], preferred_element_type=jnp.float32)

        sig = jax.nn.sigmoid(gates[:, :3 * H])     # [i | f | o] in one slab
        g_c = jnp.tanh(gates[:, 3 * H:])           # cell candidate
        i_g = sig[:, 0:H]
        f_g = sig[:, H:2 * H]
        o_g = sig[:, 2 * H:3 * H]

        c_new = f_g * c + i_g * g_c
        h_new = o_g * jnp.tanh(c_new)
        return (h_new, c_new)

    h0 = jnp.zeros((B_PAD, H_PAD), jnp.float32)
    c0 = jnp.zeros((B_PAD, H_PAD), jnp.float32)
    # Fully unrolled (T is static & tiny) -> LLO gets cross-iteration visibility.
    h_last, _ = lax.fori_loop(0, T, step, (h0, c0), unroll=True)

    # ---- Linear head on the last hidden state. ----
    out_ref[...] = (jnp.dot(h_last, wfc_ref[...],
                            preferred_element_type=jnp.float32)
                    + bfc_ref[...])


def _pad_gate_mat_np(w_t, in_dim, in_pad, H):
    """w_t: (in_dim, 4H) PyTorch-order -> (in_pad, 4*H_PAD) in [i|f|o|g] order."""
    out = np.zeros((in_pad, 4 * H_PAD), np.float32)
    for dst, src in enumerate(GATE_ORDER):
        out[:in_dim, dst * H_PAD:dst * H_PAD + H] = w_t[:, src * H:(src + 1) * H]
    return out


def pack_params(params):
    """One-time host-side packing: gate reorder + zero padding (numpy, no XLA)."""
    w_ih, w_hh, b_ih, b_hh, w_fc, b_fc = (np.asarray(p, np.float32)
                                          for p in params)
    H, O = HIDDEN, OUTPUT

    wih_p = _pad_gate_mat_np(w_ih.T, INPUT, I_PAD, H)
    whh_p = _pad_gate_mat_np(w_hh.T, H, H_PAD, H)

    b = b_ih + b_hh
    b_p = np.zeros((1, 4 * H_PAD), np.float32)
    for dst, src in enumerate(GATE_ORDER):
        b_p[0, dst * H_PAD:dst * H_PAD + H] = b[src * H:(src + 1) * H]

    wfc_p = np.zeros((H_PAD, O_PAD), np.float32)
    wfc_p[:H, :O] = w_fc.T
    bfc_p = np.zeros((1, O_PAD), np.float32)
    bfc_p[0, :O] = b_fc

    return tuple(jnp.asarray(a) for a in (wih_p, whh_p, b_p, wfc_p, bfc_p))


@jax.jit
def lstm_forward(x, packed):
    """x: (B, T, I) float32, batch_first like the PyTorch module."""
    wih_p, whh_p, b_p, wfc_p, bfc_p = packed
    B, T, I = x.shape

    # time-major, zero-padded, flattened to (T*B_PAD, I_PAD)
    x_tm = jnp.transpose(x, (1, 0, 2))                       # (T, B, I)
    x_p = jnp.zeros((T, B_PAD, I_PAD), jnp.float32).at[:, :B, :I].set(x_tm)
    x2d = x_p.reshape(T * B_PAD, I_PAD)

    # TODO(synk): for long T / large B, stream x with a gridded BlockSpec over
    # T-chunks (chunk sized for v7x's 64 MiB VMEM / 32 MiB scoped default, set
    # vmem_limit_bytes); do NOT add a 'parallel' batch axis at B=2.  At these
    # sizes the whole problem fits in VMEM in a single grid step.
    out_pad = pl.pallas_call(
        lstm_kernel,
        out_shape=jax.ShapeDtypeStruct((B_PAD, O_PAD), jnp.float32),
        scratch_shapes=[
            pltpu.VMEM((T * B_PAD, 4 * H_PAD), jnp.float32),  # hoisted x-proj
        ],
    )(x2d, wih_p, whh_p, b_p, wfc_p, bfc_p)

    return out_pad[:B, :OUTPUT]


def reference_forward(x, params):
    """Pure-JAX reference matching nn.LSTM(batch_first=True) + nn.Linear."""
    w_ih, w_hh, b_ih, b_hh, w_fc, b_fc = params
    B, T, I = x.shape
    H = HIDDEN

    def step(carry, x_t):
        h, c = carry
        gates = x_t @ w_ih.T + b_ih + h @ w_hh.T + b_hh
        i = jax.nn.sigmoid(gates[:, 0:H])
        f = jax.nn.sigmoid(gates[:, H:2 * H])
        g = jnp.tanh(gates[:, 2 * H:3 * H])
        o = jax.nn.sigmoid(gates[:, 3 * H:4 * H])
        c = f * c + i * g
        h = o * jnp.tanh(c)
        return (h, c), None

    init = (jnp.zeros((B, H), jnp.float32), jnp.zeros((B, H), jnp.float32))
    (h_last, _), _ = lax.scan(step, init, jnp.transpose(x, (1, 0, 2)))
    return h_last @ w_fc.T + b_fc


def init_params(key):
    """Deterministic init matching PyTorch shapes: uniform(-1/sqrt(H), 1/sqrt(H))."""
    k = 1.0 / np.sqrt(HIDDEN)
    ks = jax.random.split(key, 6)
    w_ih = jax.random.uniform(ks[0], (4 * HIDDEN, INPUT), jnp.float32, -k, k)
    w_hh = jax.random.uniform(ks[1], (4 * HIDDEN, HIDDEN), jnp.float32, -k, k)
    b_ih = jax.random.uniform(ks[2], (4 * HIDDEN,), jnp.float32, -k, k)
    b_hh = jax.random.uniform(ks[3], (4 * HIDDEN,), jnp.float32, -k, k)
    w_fc = jax.random.uniform(ks[4], (OUTPUT, HIDDEN), jnp.float32, -k, k)
    b_fc = jax.random.uniform(ks[5], (OUTPUT,), jnp.float32, -k, k)
    return (w_ih, w_hh, b_ih, b_hh, w_fc, b_fc)


if __name__ == "__main__":
    key = jax.random.PRNGKey(0)
    pkey, xkey = jax.random.split(key)
    params = init_params(pkey)
    packed = pack_params(params)          # one-time host-side packing

    B, T = 2, 8                           # batch=2, seq=8, input_size=3
    x = jax.random.normal(xkey, (B, T, INPUT), jnp.float32)

    out = lstm_forward(x, packed)
    out = jax.block_until_ready(out)

    ref = reference_forward(x, params)
    np.testing.assert_allclose(np.asarray(out), np.asarray(ref),
                               rtol=1e-5, atol=1e-5)
    assert out.shape == (B, OUTPUT)
    print("KERNEL_OK")
</pallas_src>

<mosaic_0001>
module attributes {stable_mosaic.version = 11 : i64} {
  func.func @lstm_kernel(%arg0: memref<64x8xf32, #tpu.memory_space<vmem>>, %arg1: memref<8x512xf32, #tpu.memory_space<vmem>>, %arg2: memref<128x512xf32, #tpu.memory_space<vmem>>, %arg3: memref<1x512xf32, #tpu.memory_space<vmem>>, %arg4: memref<128x128xf32, #tpu.memory_space<vmem>>, %arg5: memref<1x128xf32, #tpu.memory_space<vmem>>, %arg6: memref<8x128xf32, #tpu.memory_space<vmem>>, %arg7: memref<64x512xf32, #tpu.memory_space<vmem>>) attributes {dimension_semantics = [], scalar_prefetch = 0 : i64, scratch_operands = 1 : i64, tpu.core_type = #tpu.core_type<tc>} {
    %c0 = arith.constant 0 : index
    %c0_0 = arith.constant 0 : index
    %0 = vector.load %arg0[%c0, %c0_0] : memref<64x8xf32, #tpu.memory_space<vmem>>, vector<64x8xf32>
    %c0_1 = arith.constant 0 : index
    %c0_2 = arith.constant 0 : index
    %1 = vector.load %arg1[%c0_1, %c0_2] : memref<8x512xf32, #tpu.memory_space<vmem>>, vector<8x512xf32>
    %cst = arith.constant dense<0.000000e+00> : vector<64x512xf32>
    %2 = tpu.matmul %0, %1, %cst {dimension_numbers = #tpu.dot_dimension_numbers<[1], [0], [0], [1], [0, 0, 1, 1], [], []>} : vector<64x8xf32>, vector<8x512xf32>, vector<64x512xf32> -> vector<64x512xf32>
    %c0_3 = arith.constant 0 : index
    %c0_4 = arith.constant 0 : index
    %3 = vector.load %arg3[%c0_3, %c0_4] : memref<1x512xf32, #tpu.memory_space<vmem>>, vector<1x512xf32>
    %4 = vector.broadcast %3 : vector<1x512xf32> to vector<64x512xf32>
    %5 = arith.addf %2, %4 : vector<64x512xf32>
    %c0_5 = arith.constant 0 : index
    %c0_6 = arith.constant 0 : index
    %6 = vector.load %arg7[%c0_5, %c0_6] : memref<64x512xf32, #tpu.memory_space<vmem>>, vector<64x512xf32>
    tpu.vector_store %arg7[%c0_5, %c0_6], %5 {strides = array<i32>} : memref<64x512xf32, #tpu.memory_space<vmem>>, vector<64x512xf32>,
    %cst_7 = arith.constant 0.000000e+00 : f32
    %7 = vector.broadcast %cst_7 : f32 to vector<8x128xf32>
    %cst_8 = arith.constant 0.000000e+00 : f32
    %8 = vector.broadcast %cst_8 : f32 to vector<8x128xf32>
    %c0_i32 = arith.constant 0 : i32
    %c8_i32 = arith.constant 8 : i32
    %9 = arith.muli %c0_i32, %c8_i32 : i32
    %10 = tpu.assume_multiple %9, 8 : i32
    %11 = arith.index_cast %10 : i32 to index
    %c0_9 = arith.constant 0 : index
    %12 = vector.load %arg7[%11, %c0_9] : memref<64x512xf32, #tpu.memory_space<vmem>>, vector<8x512xf32>
    %c0_10 = arith.constant 0 : index
    %c0_11 = arith.constant 0 : index
    %13 = vector.load %arg2[%c0_10, %c0_11] : memref<128x512xf32, #tpu.memory_space<vmem>>, vector<128x512xf32>
    %cst_12 = arith.constant dense<0.000000e+00> : vector<8x512xf32>
    %14 = tpu.matmul %7, %13, %cst_12 {dimension_numbers = #tpu.dot_dimension_numbers<[1], [0], [0], [1], [0, 0, 1, 1], [], []>} : vector<8x128xf32>, vector<128x512xf32>, vector<8x512xf32> -> vector<8x512xf32>
    %15 = arith.addf %12, %14 : vector<8x512xf32>
    %16 = vector.extract_strided_slice %15 {offsets = [0, 0], sizes = [8, 384], strides = [1, 1]} : vector<8x512xf32> to vector<8x384xf32>
    %17 = arith.negf %16 : vector<8x384xf32>
    %18 = math.exp %17 : vector<8x384xf32>
    %cst_13 = arith.constant 1.000000e+00 : f32
    %19 = vector.broadcast %cst_13 : f32 to vector<8x384xf32>
    %20 = arith.addf %19, %18 : vector<8x384xf32>
    %21 = arith.divf %19, %20 : vector<8x384xf32>
    %22 = vector.extract_strided_slice %15 {offsets = [0, 384], sizes = [8, 128], strides = [1, 1]} : vector<8x512xf32> to vector<8x128xf32>
    %23 = math.tanh %22 : vector<8x128xf32>
    %24 = vector.extract_strided_slice %21 {offsets = [0, 0], sizes = [8, 128], strides = [1, 1]} : vector<8x384xf32> to vector<8x128xf32>
    %25 = vector.extract_strided_slice %21 {offsets = [0, 128], sizes = [8, 128], strides = [1, 1]} : vector<8x384xf32> to vector<8x128xf32>
    %26 = vector.extract_strided_slice %21 {offsets = [0, 256], sizes = [8, 128], strides = [1, 1]} : vector<8x384xf32> to vector<8x128xf32>
    %27 = arith.mulf %25, %8 : vector<8x128xf32>
    %28 = arith.mulf %24, %23 : vector<8x128xf32>
    %29 = arith.addf %27, %28 : vector<8x128xf32>
    %30 = math.tanh %29 : vector<8x128xf32>
    %31 = arith.mulf %26, %30 : vector<8x128xf32>
    %c1_i32 = arith.constant 1 : i32
    %c8_i32_14 = arith.constant 8 : i32
    %32 = arith.muli %c1_i32, %c8_i32_14 : i32
    %33 = tpu.assume_multiple %32, 8 : i32
    %34 = arith.index_cast %33 : i32 to index
    %c0_15 = arith.constant 0 : index
    %35 = vector.load %arg7[%34, %c0_15] : memref<64x512xf32, #tpu.memory_space<vmem>>, vector<8x512xf32>
    %c0_16 = arith.constant 0 : index
    %c0_17 = arith.constant 0 : index
    %36 = vector.load %arg2[%c0_16, %c0_17] : memref<128x512xf32, #tpu.memory_space<vmem>>, vector<128x512xf32>
    %cst_18 = arith.constant dense<0.000000e+00> : vector<8x512xf32>
    %37 = tpu.matmul %31, %36, %cst_18 {dimension_numbers = #tpu.dot_dimension_numbers<[1], [0], [0], [1], [0, 0, 1, 1], [], []>} : vector<8x128xf32>, vector<128x512xf32>, vector<8x512xf32> -> vector<8x512xf32>
    %38 = arith.addf %35, %37 : vector<8x512xf32>
    %39 = vector.extract_strided_slice %38 {offsets = [0, 0], sizes = [8, 384], strides = [1, 1]} : vector<8x512xf32> to vector<8x384xf32>
    %40 = arith.negf %39 : vector<8x384xf32>
    %41 = math.exp %40 : vector<8x384xf32>
    %cst_19 = arith.constant 1.000000e+00 : f32
    %42 = vector.broadcast %cst_19 : f32 to vector<8x384xf32>
    %43 = arith.addf %42, %41 : vector<8x384xf32>
    %44 = arith.divf %42, %43 : vector<8x384xf32>
    %45 = vector.extract_strided_slice %38 {offsets = [0, 384], sizes = [8, 128], strides = [1, 1]} : vector<8x512xf32> to vector<8x128xf32>
    %46 = math.tanh %45 : vector<8x128xf32>
    %47 = vector.extract_strided_slice %44 {offsets = [0, 0], sizes = [8, 128], strides = [1, 1]} : vector<8x384xf32> to vector<8x128xf32>
    %48 = vector.extract_strided_slice %44 {offsets = [0, 128], sizes = [8, 128], strides = [1, 1]} : vector<8x384xf32> to vector<8x128xf32>
    %49 = vector.extract_strided_slice %44 {offsets = [0, 256], sizes = [8, 128], strides = [1, 1]} : vector<8x384xf32> to vector<8x128xf32>
    %50 = arith.mulf %48, %29 : vector<8x128xf32>
    %51 = arith.mulf %47, %46 : vector<8x128xf32>
    %52 = arith.addf %50, %51 : vector<8x128xf32>
    %53 = math.tanh %52 : vector<8x128xf32>
    %54 = arith.mulf %49, %53 : vector<8x128xf32>
    %c2_i32 = arith.constant 2 : i32
    %c8_i32_20 = arith.constant 8 : i32
    %55 = arith.muli %c2_i32, %c8_i32_20 : i32
    %56 = tpu.assume_multiple %55, 8 : i32
    %57 = arith.index_cast %56 : i32 to index
    %c0_21 = arith.constant 0 : index
    %58 = vector.load %arg7[%57, %c0_21] : memref<64x512xf32, #tpu.memory_space<vmem>>, vector<8x512xf32>
    %c0_22 = arith.constant 0 : index
    %c0_23 = arith.constant 0 : index
    %59 = vector.load %arg2[%c0_22, %c0_23] : memref<128x512xf32, #tpu.memory_space<vmem>>, vector<128x512xf32>
    %cst_24 = arith.constant dense<0.000000e+00> : vector<8x512xf32>
    %60 = tpu.matmul %54, %59, %cst_24 {dimension_numbers = #tpu.dot_dimension_numbers<[1], [0], [0], [1], [0, 0, 1, 1], [], []>} : vector<8x128xf32>, vector<128x512xf32>, vector<8x512xf32> -> vector<8x512xf32>
    %61 = arith.addf %58, %60 : vector<8x512xf32>
    %62 = vector.extract_strided_slice %61 {offsets = [0, 0], sizes = [8, 384], strides = [1, 1]} : vector<8x512xf32> to vector<8x384xf32>
    %63 = arith.negf %62 : vector<8x384xf32>
    %64 = math.exp %63 : vector<8x384xf32>
    %cst_25 = arith.constant 1.000000e+00 : f32
    %65 = vector.broadcast %cst_25 : f32 to vector<8x384xf32>
    %66 = arith.addf %65, %64 : vector<8x384xf32>
    %67 = arith.divf %65, %66 : vector<8x384xf32>
    %68 = vector.extract_strided_slice %61 {offsets = [0, 384], sizes = [8, 128], strides = [1, 1]} : vector<8x512xf32> to vector<8x128xf32>
    %69 = math.tanh %68 : vector<8x128xf32>
    %70 = vector.extract_strided_slice %67 {offsets = [0, 0], sizes = [8, 128], strides = [1, 1]} : vector<8x384xf32> to vector<8x128xf32>
    %71 = vector.extract_strided_slice %67 {offsets = [0, 128], sizes = [8, 128], strides = [1, 1]} : vector<8x384xf32> to vector<8x128xf32>
    %72 = vector.extract_strided_slice %67 {offsets = [0, 256], sizes = [8, 128], strides = [1, 1]} : vector<8x384xf32> to vector<8x128xf32>
    %73 = arith.mulf %71, %52 : vector<8x128xf32>
    %74 = arith.mulf %70, %69 : vector<8x128xf32>
    %75 = arith.addf %73, %74 : vector<8x128xf32>
    %76 = math.tanh %75 : vector<8x128xf32>
    %77 = arith.mulf %72, %76 : vector<8x128xf32>
    %c3_i32 = arith.constant 3 : i32
    %c8_i32_26 = arith.constant 8 : i32
    %78 = arith.muli %c3_i32, %c8_i32_26 : i32
    %79 = tpu.assume_multiple %78, 8 : i32
    %80 = arith.index_cast %79 : i32 to index
    %c0_27 = arith.constant 0 : index
    %81 = vector.load %arg7[%80, %c0_27] : memref<64x512xf32, #tpu.memory_space<vmem>>, vector<8x512xf32>
    %c0_28 = arith.constant 0 : index
    %c0_29 = arith.constant 0 : index
    %82 = vector.load %arg2[%c0_28, %c0_29] : memref<128x512xf32, #tpu.memory_space<vmem>>, vector<128x512xf32>
    %cst_30 = arith.constant dense<0.000000e+00> : vector<8x512xf32>
    %83 = tpu.matmul %77, %82, %cst_30 {dimension_numbers = #tpu.dot_dimension_numbers<[1], [0], [0], [1], [0, 0, 1, 1], [], []>} : vector<8x128xf32>, vector<128x512xf32>, vector<8x512xf32> -> vector<8x512xf32>
    %84 = arith.addf %81, %83 : vector<8x512xf32>
    %85 = vector.extract_strided_slice %84 {offsets = [0, 0], sizes = [8, 384], strides = [1, 1]} : vector<8x512xf32> to vector<8x384xf32>
    %86 = arith.negf %85 : vector<8x384xf32>
    %87 = math.exp %86 : vector<8x384xf32>
    %cst_31 = arith.constant 1.000000e+00 : f32
    %88 = vector.broadcast %cst_31 : f32 to vector<8x384xf32>
    %89 = arith.addf %88, %87 : vector<8x384xf32>
    %90 = arith.divf %88, %89 : vector<8x384xf32>
    %91 = vector.extract_strided_slice %84 {offsets = [0, 384], sizes = [8, 128], strides = [1, 1]} : vector<8x512xf32> to vector<8x128xf32>
    %92 = math.tanh %91 : vector<8x128xf32>
    %93 = vector.extract_strided_slice %90 {offsets = [0, 0], sizes = [8, 128], strides = [1, 1]} : vector<8x384xf32> to vector<8x128xf32>
    %94 = vector.extract_strided_slice %90 {offsets = [0, 128], sizes = [8, 128], strides = [1, 1]} : vector<8x384xf32> to vector<8x128xf32>
    %95 = vector.extract_strided_slice %90 {offsets = [0, 256], sizes = [8, 128], strides = [1, 1]} : vector<8x384xf32> to vector<8x128xf32>
    %96 = arith.mulf %94, %75 : vector<8x128xf32>
    %97 = arith.mulf %93, %92 : vector<8x128xf32>
    %98 = arith.addf %96, %97 : vector<8x128xf32>
    %99 = math.tanh %98 : vector<8x128xf32>
    %100 = arith.mulf %95, %99 : vector<8x128xf32>
    %c4_i32 = arith.constant 4 : i32
    %c8_i32_32 = arith.constant 8 : i32
    %101 = arith.muli %c4_i32, %c8_i32_32 : i32
    %102 = tpu.assume_multiple %101, 8 : i32
    %103 = arith.index_cast %102 : i32 to index
    %c0_33 = arith.constant 0 : index
    %104 = vector.load %arg7[%103, %c0_33] : memref<64x512xf32, #tpu.memory_space<vmem>>, vector<8x512xf32>
    %c0_34 = arith.constant 0 : index
    %c0_35 = arith.constant 0 : index
    %105 = vector.load %arg2[%c0_34, %c0_35] : memref<128x512xf32, #tpu.memory_space<vmem>>, vector<128x512xf32>
    %cst_36 = arith.constant dense<0.000000e+00> : vector<8x512xf32>
    %106 = tpu.matmul %100, %105, %cst_36 {dimension_numbers = #tpu.dot_dimension_numbers<[1], [0], [0], [1], [0, 0, 1, 1], [], []>} : vector<8x128xf32>, vector<128x512xf32>, vector<8x512xf32> -> vector<8x512xf32>
    %107 = arith.addf %104, %106 : vector<8x512xf32>
    %108 = vector.extract_strided_slice %107 {offsets = [0, 0], sizes = [8, 384], strides = [1, 1]} : vector<8x512xf32> to vector<8x384xf32>
    %109 = arith.negf %108 : vector<8x384xf32>
    %110 = math.exp %109 : vector<8x384xf32>
    %cst_37 = arith.constant 1.000000e+00 : f32
    %111 = vector.broadcast %cst_37 : f32 to vector<8x384xf32>
    %112 = arith.addf %111, %110 : vector<8x384xf32>
    %113 = arith.divf %111, %112 : vector<8x384xf32>
    %114 = vector.extract_strided_slice %107 {offsets = [0, 384], sizes = [8, 128], strides = [1, 1]} : vector<8x512xf32> to vector<8x128xf32>
    %115 = math.tanh %114 : vector<8x128xf32>
    %116 = vector.extract_strided_slice %113 {offsets = [0, 0], sizes = [8, 128], strides = [1, 1]} : vector<8x384xf32> to vector<8x128xf32>
    %117 = vector.extract_strided_slice %113 {offsets = [0, 128], sizes = [8, 128], strides = [1, 1]} : vector<8x384xf32> to vector<8x128xf32>
    %118 = vector.extract_strided_slice %113 {offsets = [0, 256], sizes = [8, 128], strides = [1, 1]} : vector<8x384xf32> to vector<8x128xf32>
    %119 = arith.mulf %117, %98 : vector<8x128xf32>
    %120 = arith.mulf %116, %115 : vector<8x128xf32>
    %121 = arith.addf %119, %120 : vector<8x128xf32>
    %122 = math.tanh %121 : vector<8x128xf32>
    %123 = arith.mulf %118, %122 : vector<8x128xf32>
    %c5_i32 = arith.constant 5 : i32
    %c8_i32_38 = arith.constant 8 : i32
    %124 = arith.muli %c5_i32, %c8_i32_38 : i32
    %125 = tpu.assume_multiple %124, 8 : i32
    %126 = arith.index_cast %125 : i32 to index
    %c0_39 = arith.constant 0 : index
    %127 = vector.load %arg7[%126, %c0_39] : memref<64x512xf32, #tpu.memory_space<vmem>>, vector<8x512xf32>
    %c0_40 = arith.constant 0 : index
    %c0_41 = arith.constant 0 : index
    %128 = vector.load %arg2[%c0_40, %c0_41] : memref<128x512xf32, #tpu.memory_space<vmem>>, vector<128x512xf32>
    %cst_42 = arith.constant dense<0.000000e+00> : vector<8x512xf32>
    %129 = tpu.matmul %123, %128, %cst_42 {dimension_numbers = #tpu.dot_dimension_numbers<[1], [0], [0], [1], [0, 0, 1, 1], [], []>} : vector<8x128xf32>, vector<128x512xf32>, vector<8x512xf32> -> vector<8x512xf32>
    %130 = arith.addf %127, %129 : vector<8x512xf32>
    %131 = vector.extract_strided_slice %130 {offsets = [0, 0], sizes = [8, 384], strides = [1, 1]} : vector<8x512xf32> to vector<8x384xf32>
    %132 = arith.negf %131 : vector<8x384xf32>
    %133 = math.exp %132 : vector<8x384xf32>
    %cst_43 = arith.constant 1.000000e+00 : f32
    %134 = vector.broadcast %cst_43 : f32 to vector<8x384xf32>
    %135 = arith.addf %134, %133 : vector<8x384xf32>
    %136 = arith.divf %134, %135 : vector<8x384xf32>
    %137 = vector.extract_strided_slice %130 {offsets = [0, 384], sizes = [8, 128], strides = [1, 1]} : vector<8x512xf32> to vector<8x128xf32>
    %138 = math.tanh %137 : vector<8x128xf32>
    %139 = vector.extract_strided_slice %136 {offsets = [0, 0], sizes = [8, 128], strides = [1, 1]} : vector<8x384xf32> to vector<8x128xf32>
    %140 = vector.extract_strided_slice %136 {offsets = [0, 128], sizes = [8, 128], strides = [1, 1]} : vector<8x384xf32> to vector<8x128xf32>
    %141 = vector.extract_strided_slice %136 {offsets = [0, 256], sizes = [8, 128], strides = [1, 1]} : vector<8x384xf32> to vector<8x128xf32>
    %142 = arith.mulf %140, %121 : vector<8x128xf32>
    %143 = arith.mulf %139, %138 : vector<8x128xf32>
    %144 = arith.addf %142, %143 : vector<8x128xf32>
    %145 = math.tanh %144 : vector<8x128xf32>
    %146 = arith.mulf %141, %145 : vector<8x128xf32>
    %c6_i32 = arith.constant 6 : i32
    %c8_i32_44 = arith.constant 8 : i32
    %147 = arith.muli %c6_i32, %c8_i32_44 : i32
    %148 = tpu.assume_multiple %147, 8 : i32
    %149 = arith.index_cast %148 : i32 to index
    %c0_45 = arith.constant 0 : index
    %150 = vector.load %arg7[%149, %c0_45] : memref<64x512xf32, #tpu.memory_space<vmem>>, vector<8x512xf32>
    %c0_46 = arith.constant 0 : index
    %c0_47 = arith.constant 0 : index
    %151 = vector.load %arg2[%c0_46, %c0_47] : memref<128x512xf32, #tpu.memory_space<vmem>>, vector<128x512xf32>
    %cst_48 = arith.constant dense<0.000000e+00> : vector<8x512xf32>
    %152 = tpu.matmul %146, %151, %cst_48 {dimension_numbers = #tpu.dot_dimension_numbers<[1], [0], [0], [1], [0, 0, 1, 1], [], []>} : vector<8x128xf32>, vector<128x512xf32>, vector<8x512xf32> -> vector<8x512xf32>
    %153 = arith.addf %150, %152 : vector<8x512xf32>
    %154 = vector.extract_strided_slice %153 {offsets = [0, 0], sizes = [8, 384], strides = [1, 1]} : vector<8x512xf32> to vector<8x384xf32>
    %155 = arith.negf %154 : vector<8x384xf32>
    %156 = math.exp %155 : vector<8x384xf32>
    %cst_49 = arith.constant 1.000000e+00 : f32
    %157 = vector.broadcast %cst_49 : f32 to vector<8x384xf32>
    %158 = arith.addf %157, %156 : vector<8x384xf32>
    %159 = arith.divf %157, %158 : vector<8x384xf32>
    %160 = vector.extract_strided_slice %153 {offsets = [0, 384], sizes = [8, 128], strides = [1, 1]} : vector<8x512xf32> to vector<8x128xf32>
    %161 = math.tanh %160 : vector<8x128xf32>
    %162 = vector.extract_strided_slice %159 {offsets = [0, 0], sizes = [8, 128], strides = [1, 1]} : vector<8x384xf32> to vector<8x128xf32>
    %163 = vector.extract_strided_slice %159 {offsets = [0, 128], sizes = [8, 128], strides = [1, 1]} : vector<8x384xf32> to vector<8x128xf32>
    %164 = vector.extract_strided_slice %159 {offsets = [0, 256], sizes = [8, 128], strides = [1, 1]} : vector<8x384xf32> to vector<8x128xf32>
    %165 = arith.mulf %163, %144 : vector<8x128xf32>
    %166 = arith.mulf %162, %161 : vector<8x128xf32>
    %167 = arith.addf %165, %166 : vector<8x128xf32>
    %168 = math.tanh %167 : vector<8x128xf32>
    %169 = arith.mulf %164, %168 : vector<8x128xf32>
    %c7_i32 = arith.constant 7 : i32
    %c8_i32_50 = arith.constant 8 : i32
    %170 = arith.muli %c7_i32, %c8_i32_50 : i32
    %171 = tpu.assume_multiple %170, 8 : i32
    %172 = arith.index_cast %171 : i32 to index
    %c0_51 = arith.constant 0 : index
    %173 = vector.load %arg7[%172, %c0_51] : memref<64x512xf32, #tpu.memory_space<vmem>>, vector<8x512xf32>
    %c0_52 = arith.constant 0 : index
    %c0_53 = arith.constant 0 : index
    %174 = vector.load %arg2[%c0_52, %c0_53] : memref<128x512xf32, #tpu.memory_space<vmem>>, vector<128x512xf32>
    %cst_54 = arith.constant dense<0.000000e+00> : vector<8x512xf32>
    %175 = tpu.matmul %169, %174, %cst_54 {dimension_numbers = #tpu.dot_dimension_numbers<[1], [0], [0], [1], [0, 0, 1, 1], [], []>} : vector<8x128xf32>, vector<128x512xf32>, vector<8x512xf32> -> vector<8x512xf32>
    %176 = arith.addf %173, %175 : vector<8x512xf32>
    %177 = vector.extract_strided_slice %176 {offsets = [0, 0], sizes = [8, 384], strides = [1, 1]} : vector<8x512xf32> to vector<8x384xf32>
    %178 = arith.negf %177 : vector<8x384xf32>
    %179 = math.exp %178 : vector<8x384xf32>
    %cst_55 = arith.constant 1.000000e+00 : f32
    %180 = vector.broadcast %cst_55 : f32 to vector<8x384xf32>
    %181 = arith.addf %180, %179 : vector<8x384xf32>
    %182 = arith.divf %180, %181 : vector<8x384xf32>
    %183 = vector.extract_strided_slice %176 {offsets = [0, 384], sizes = [8, 128], strides = [1, 1]} : vector<8x512xf32> to vector<8x128xf32>
    %184 = math.tanh %183 : vector<8x128xf32>
    %185 = vector.extract_strided_slice %182 {offsets = [0, 0], sizes = [8, 128], strides = [1, 1]} : vector<8x384xf32> to vector<8x128xf32>
    %186 = vector.extract_strided_slice %182 {offsets = [0, 128], sizes = [8, 128], strides = [1, 1]} : vector<8x384xf32> to vector<8x128xf32>
    %187 = vector.extract_strided_slice %182 {offsets = [0, 256], sizes = [8, 128], strides = [1, 1]} : vector<8x384xf32> to vector<8x128xf32>
    %188 = arith.mulf %186, %167 : vector<8x128xf32>
    %189 = arith.mulf %185, %184 : vector<8x128xf32>
    %190 = arith.addf %188, %189 : vector<8x128xf32>
    %191 = math.tanh %190 : vector<8x128xf32>
    %192 = arith.mulf %187, %191 : vector<8x128xf32>
    %c8_i32_56 = arith.constant 8 : i32
    %c0_57 = arith.constant 0 : index
    %c0_58 = arith.constant 0 : index
    %193 = vector.load %arg4[%c0_57, %c0_58] : memref<128x128xf32, #tpu.memory_space<vmem>>, vector<128x128xf32>
    %cst_59 = arith.constant dense<0.000000e+00> : vector<8x128xf32>
    %194 = tpu.matmul %192, %193, %cst_59 {dimension_numbers = #tpu.dot_dimension_numbers<[1], [0], [0], [1], [0, 0, 1, 1], [], []>} : vector<8x128xf32>, vector<128x128xf32>, vector<8x128xf32> -> vector<8x128xf32>
    %c0_60 = arith.constant 0 : index
    %c0_61 = arith.constant 0 : index
    %195 = vector.load %arg5[%c0_60, %c0_61] : memref<1x128xf32, #tpu.memory_space<vmem>>, vector<1x128xf32>
    %196 = vector.broadcast %195 : vector<1x128xf32> to vector<8x128xf32>
    %197 = arith.addf %194, %196 : vector<8x128xf32>
    %c0_62 = arith.constant 0 : index
    %c0_63 = arith.constant 0 : index
    %198 = vector.load %arg6[%c0_62, %c0_63] : memref<8x128xf32, #tpu.memory_space<vmem>>, vector<8x128xf32>
    tpu.vector_store %arg6[%c0_62, %c0_63], %197 {strides = array<i32>} : memref<8x128xf32, #tpu.memory_space<vmem>>, vector<8x128xf32>,
    return
  }
}

</mosaic_0001>

<bundles_post_ra>
// kernel: lstm_forward.1
= control target key start
LH: loop header
LB: loop body
LE: loop exit
PB: predicated region body
PF: predicated region fallthrough
CT: control target
= control target key end

     0   :  { %11 = vsyncpa [#allocation4], 0  ;;  %s3385_s0 = inlined_call_operand.vmem [shape: f32[64,8], index: 0, kind: input, shape index: {}]   ;;  %s3386_s1 = inlined_call_operand.vmem [shape: f32[8,512], index: 1, kind: input, shape index: {}]   ;;  %s3387_s2 = inlined_call_operand.hbm [shape: f32[128,512], index: 2, kind: input, shape index: {}]   ;;  %s3388_s3 = inlined_call_operand.vmem [shape: f32[1,512], index: 3, kind: input, shape index: {}]   ;;  %s3389_s4 = inlined_call_operand.hbm [shape: f32[128,128], index: 4, kind: input, shape index: {}]   ;;  %s3390_s5 = inlined_call_operand.vmem [shape: f32[1,128], index: 5, kind: input, shape index: {}]   ;;  %s3391_s6 = inlined_call_operand.vmem [shape: f32[8,128], index: 6, kind: output, shape index: {}]  }
   0x1   :  { %12 = vsyncpa [#allocation6], 0  ;;  %s2833_s21 = smov [#allocation3]   ;;  %s2785_s25 = scalar_lea.hbm %s3387_s2, 8192 }
   0x2   :  { %s22_s22 = sshll.u32 %s2833_s21, 4  ;;  %p2786_p0 = scmp.ne.s32.totalorder %s3387_s2, %s2785_s25  ;;  %s23_s22 = int_to_ptr.vmem [resolvable:$true] %s22_s22 }
   0x3   :  { %p2789_p1 = scmp.lt.u32.totalorder %s2785_s25, %s3387_s2 }
   0x5   :  { %p2791_p2 = pnand %p2789_p1, %p2786_p0 }
   0x7   :  { %2794 = shalt.err (!%p2791_p2)
}
   0x8   :  { %s2795_s30 = scalar_lea.vmem %s23_s22, 8192  ;;  %p2800_p4 = scmp.lt.s32.totalorder %s23_s22, %s23_s22 }
   0x9   :  { %p2796_p3 = scmp.ne.s32.totalorder %s23_s22, %s2795_s30  ;;  %p2801_p5 = scmp.lt.s32.totalorder %s2795_s30, %s2795_s30 }
   0xb   :  { %p2802_p6 = por %p2801_p5, %p2800_p4 }
   0xd   :  { %p2803_p7 = pnand %p2802_p6, %p2796_p3 }
   0xf   :  { %2806 = shalt.err (!%p2803_p7)
}
  0x10   :  { %s2834_s7 = smov 512   ;;  %s2835_s8 = smov 32  }
  0x11   :  { %28 = dma.hbm_to_vmem [thread:$0]  %s3387_s2, 8192, %s23_s22, [#allocation4], %s2834_s7, %s2834_s7, %s2835_s8  }
  0x12   :  { %s2836_s11 = smov [#allocation5]   ;;  %s2807_s15 = scalar_lea.hbm %s3389_s4, 2048 }
  0x13   :  { %s36_s12 = sshll.u32 %s2836_s11, 4  ;;  %p2808_p8 = scmp.ne.s32.totalorder %s3389_s4, %s2807_s15  ;;  %s37_s12 = int_to_ptr.vmem [resolvable:$true] %s36_s12 }
  0x14   :  { %p2811_p9 = scmp.lt.u32.totalorder %s2807_s15, %s3389_s4 }
  0x16   :  { %p2813_p10 = pnand %p2811_p9, %p2808_p8 }
  0x18   :  { %2816 = shalt.err (!%p2813_p10)
}
  0x19   :  { %s2817_s20 = scalar_lea.vmem %s37_s12, 2048  ;;  %p2822_p12 = scmp.lt.s32.totalorder %s37_s12, %s37_s12 }
  0x1a   :  { %p2818_p11 = scmp.ne.s32.totalorder %s37_s12, %s2817_s20  ;;  %p2823_p13 = scmp.lt.s32.totalorder %s2817_s20, %s2817_s20 }
  0x1c   :  { %p2824_p0 = por %p2823_p13, %p2822_p12 }
  0x1e   :  { %p2825_p1 = pnand %p2824_p0, %p2818_p11 }
  0x20   :  { %2828 = shalt.err (!%p2825_p1)
}
  0x21   :  { %s2837_s2 = smov 128   ;;  %s2838_s21 = smov 8  }
  0x22   :  { %42 = dma.hbm_to_vmem [thread:$0]  %s3389_s4, 2048, %s37_s12, [#allocation6], %s2837_s2, %s2837_s2, %s2838_s21  }
  0x23   :  { %2829 = dma.done.wait [#allocation4], 8192  }
  0x24   :  { %2830 = vsyncadd [#allocation4], 4294959104 }
  0x25   :  { %2831 = dma.done.wait [#allocation6], 2048  }
  0x26   :  { %2832 = vsyncadd [#allocation6], 4294965248  ;;  %v2839_v0 = vmov 0.0   ;;  %v60_v1 = vld [vmem:[%s3386_s1 + $0x8] sm:$0xff]  ;;  %v62_v2 = vld [vmem:[%s3386_s1 + $0x18] sm:$0xff]  ;;  %vm85_vm0 = vcmask 64512  }
  0x27   :  { %174 = vmatprep.mubr.f32.mxu0 %v2839_v0  ;;  %287 = vmatprep.mubr.f32.mxu1 %v2839_v0  ;;  %v59_v3 = vld [vmem:[%s3386_s1] sm:$0xff]  ;;  %v61_v4 = vld [vmem:[%s3386_s1 + $0x10] sm:$0xff]  ;;  %v376_v6 = vld [vmem:[#allocation3 + $0x8] sm:$0xff]  ;;  %vm2841_vm1 = vmmov 0  }
  0x28   :  { %110 = vmatprep.subr.mxu0 %v60_v1  ;;  %223 = vmatprep.subr.mxu1 %v62_v2  ;;  %v51_v5 = vld [vmem:[%s3385_s0] sm:$0xff]  ;;  %v380_v7 = vld [vmem:[#allocation3 + $0x28] sm:$0xff]  ;;  %v378_v8 = vld [vmem:[#allocation3 + $0x18] sm:$0xff] }
  0x29   :  { %111 = vmatpush1.msra.mxu0 %v59_v3  ;;  %224 = vmatpush1.msra.mxu1 %v61_v4  ;;  %v382_v9 = vld [vmem:[#allocation3 + $0x38] sm:$0xff]  ;;  %v2920_v10 = vpack.c.bf16 %v380_v7, %v376_v6  ;;  %v375_v12 = vld [vmem:[#allocation3] sm:$0xff]  ;;  %v377_v14 = vld [vmem:[#allocation3 + $0x10] sm:$0xff] }
  0x2a   :  { %1955 = vmatmul.mubr.msk.f32.vlgmr.msra.gmra.mrb[0].mxu0 %vm85_vm0, %v51_v5  ;;  %1963 = vmatmul.mubr.msk.f32.vlgmr.msra.gmra.mrb[0].mxu1 %vm85_vm0, %v51_v5  ;;  %v2922_v11 = vpack.c.bf16 %v382_v9, %v378_v8  ;;  %v379_v13 = vld [vmem:[#allocation3 + $0x20] sm:$0xff]  ;;  %v381_v16 = vld [vmem:[#allocation3 + $0x30] sm:$0xff]  ;;  %v52_v17 = vld [vmem:[%s3385_s0 + $0x8] sm:$0xff] }
  0x2b   :  { %v2924_v15 = vpack.c.bf16 %v379_v13, %v375_v12  ;;  %180 = vmatprep.mubr.f32.mxu0 %v2839_v0  ;;  %293 = vmatprep.mubr.f32.mxu1 %v2839_v0  ;;  %v384_v18 = vld [vmem:[#allocation3 + $0x48] sm:$0xff]  ;;  %v2933_v19 = vpack.c.bf16 %v381_v16, %v377_v14  ;;  %v386_v21 = vld [vmem:[#allocation3 + $0x58] sm:$0xff]  ;;  %v383_v25 = vld [vmem:[#allocation3 + $0x40] sm:$0xff] }
  0x2c   :  { %2049 = vmatprep.subr.bf16.mxu0 %v2920_v10  ;;  %2081 = vmatprep.subr.bf16.mxu1 %v2922_v11  ;;  %v388_v20 = vld [vmem:[#allocation3 + $0x68] sm:$0xff]  ;;  %v390_v22 = vld [vmem:[#allocation3 + $0x78] sm:$0xff]  ;;  %v387_v26 = vld [vmem:[#allocation3 + $0x60] sm:$0xff] }
  0x2d   :  { %2051 = vmatpush1.bf16.msra.mxu0 %v2924_v15  ;;  %v2936_v23 = vpack.c.bf16 %v388_v20, %v384_v18  ;;  %v2938_v24 = vpack.c.bf16 %v390_v22, %v386_v21  ;;  %v385_v27 = vld [vmem:[#allocation3 + $0x50] sm:$0xff]  ;;  %2083 = vmatpush1.bf16.msra.mxu1 %v2933_v19  ;;  %v2942_v28 = vpack.c.bf16 %v387_v26, %v383_v25  ;;  %v392_v31 = vld [vmem:[#allocation3 + $0x88] sm:$0xff]  ;;  %v394_v34 = vld [vmem:[#allocation3 + $0x98] sm:$0xff] }
  0x2e   :  { %1956 = vmatmul.mubr.msk.f32.gmra.mrb[2].mxu0 %vm85_vm0, %v52_v17  ;;  %v389_v29 = vld [vmem:[#allocation3 + $0x70] sm:$0xff]  ;;  %1964 = vmatmul.mubr.msk.f32.gmra.mrb[2].mxu1 %vm85_vm0, %v52_v17  ;;  %v396_v33 = vld [vmem:[#allocation3 + $0xa8] sm:$0xff]  ;;  %v398_v35 = vld [vmem:[#allocation3 + $0xb8] sm:$0xff] }
  0x2f   :  { %v53_v30 = vld [vmem:[%s3385_s0 + $0x10] sm:$0xff]  ;;  %2053 = vmatprep.subr.bf16.mxu0 %v2936_v23  ;;  %v2949_v32 = vpack.c.bf16 %v389_v29, %v385_v27  ;;  %2085 = vmatprep.subr.bf16.mxu1 %v2938_v24  ;;  %v2953_v36 = vpack.c.bf16 %v396_v33, %v392_v31  ;;  %v2955_v37 = vpack.c.bf16 %v398_v35, %v394_v34  ;;  %v391_v38 = vld [vmem:[#allocation3 + $0x80] sm:$0xff]  ;;  %v54_v43 = vld [vmem:[%s3385_s0 + $0x18] sm:$0xff] }
  0x30   :  { %186 = vmatprep.mubr.f32.mxu0 %v2839_v0  ;;  %v395_v39 = vld [vmem:[#allocation3 + $0xa0] sm:$0xff]  ;;  %v393_v40 = vld [vmem:[#allocation3 + $0x90] sm:$0xff]  ;;  %299 = vmatprep.mubr.f32.mxu1 %v2839_v0  ;;  %v400_v44 = vld [vmem:[#allocation3 + $0xc8] sm:$0xff] }
  0x31   :  { %2055 = vmatpush1.bf16.msra.mxu0 %v2942_v28  ;;  %v2959_v41 = vpack.c.bf16 %v395_v39, %v391_v38  ;;  %v397_v42 = vld [vmem:[#allocation3 + $0xb0] sm:$0xff]  ;;  %2087 = vmatpush1.bf16.msra.mxu1 %v2949_v32  ;;  %v404_v46 = vld [vmem:[#allocation3 + $0xe8] sm:$0xff]  ;;  %v402_v47 = vld [vmem:[#allocation3 + $0xd8] sm:$0xff] }
  0x32   :  { %1957 = vmatmul.mubr.msk.f32.gmra.mrb[4].mxu0 %vm85_vm0, %v53_v30  ;;  %v2966_v45 = vpack.c.bf16 %v397_v42, %v393_v40  ;;  %v406_v48 = vld [vmem:[#allocation3 + $0xf8] sm:$0xff]  ;;  %1965 = vmatmul.mubr.msk.f32.gmra.mrb[4].mxu1 %vm85_vm0, %v53_v30  ;;  %v2970_v49 = vpack.c.bf16 %v404_v46, %v400_v44  ;;  %v399_v50 = vld [vmem:[#allocation3 + $0xc0] sm:$0xff]  ;;  %v401_v52 = vld [vmem:[#allocation3 + $0xd0] sm:$0xff] }
  0x33   :  { %2057 = vmatprep.subr.bf16.mxu0 %v2953_v36  ;;  %v403_v51 = vld [vmem:[#allocation3 + $0xe0] sm:$0xff]  ;;  %2089 = vmatprep.subr.bf16.mxu1 %v2955_v37  ;;  %v2974_v53 = vpack.c.bf16 %v406_v48, %v402_v47  ;;  %v405_v54 = vld [vmem:[#allocation3 + $0xf0] sm:$0xff]  ;;  %v408_v55 = vld [vmem:[#allocation3 + $0x108] sm:$0xff] }
  0x34   :  { %192 = vmatprep.mubr.f32.mxu0 %v2839_v0  ;;  %305 = vmatprep.mubr.f32.mxu1 %v2839_v0  ;;  %v2978_v56 = vpack.c.bf16 %v403_v51, %v399_v50  ;;  %v412_v57 = vld [vmem:[#allocation3 + $0x128] sm:$0xff]  ;;  %v410_v58 = vld [vmem:[#allocation3 + $0x118] sm:$0xff]  ;;  %v2982_v60 = vpack.c.bf16 %v405_v54, %v401_v52  ;;  %v407_v61 = vld [vmem:[#allocation3 + $0x100] sm:$0xff] }
  0x35   :  { %2059 = vmatpush1.bf16.msra.mxu0 %v2959_v41  ;;  %v414_v59 = vld [vmem:[#allocation3 + $0x138] sm:$0xff]  ;;  %2091 = vmatpush1.bf16.msra.mxu1 %v2966_v45  ;;  %v411_v62 = vld [vmem:[#allocation3 + $0x120] sm:$0xff]  ;;  %v2989_v1 = vpack.c.bf16 %v412_v57, %v408_v55  ;;  %v409_v2 = vld [vmem:[#allocation3 + $0x110] sm:$0xff] }
  0x36   :  { %1958 = vmatmul.mubr.msk.f32.gmra.mrb[6].mxu0 %vm85_vm0, %v54_v43  ;;  %1966 = vmatmul.mubr.msk.f32.gmra.mrb[6].mxu1 %vm85_vm0, %v54_v43  ;;  %v55_v63 = vld [vmem:[%s3385_s0 + $0x20] sm:$0xff]  ;;  %v413_v3 = vld [vmem:[#allocation3 + $0x130] sm:$0xff]  ;;  %v2993_v4 = vpack.c.bf16 %v414_v59, %v410_v58  ;;  %v416_v5 = vld [vmem:[#allocation3 + $0x148] sm:$0xff]  ;;  %v2997_v7 = vpack.c.bf16 %v411_v62, %v407_v61  ;;  %v65_v62 = vlaneseq }
  0x37   :  { %2061 = vmatprep.subr.bf16.mxu0 %v2970_v49  ;;  %2093 = vmatprep.subr.bf16.mxu1 %v2974_v53  ;;  %v420_v6 = vld [vmem:[#allocation3 + $0x168] sm:$0xff]  ;;  %v418_v8 = vld [vmem:[#allocation3 + $0x158] sm:$0xff]  ;;  %v3001_v12 = vpack.c.bf16 %v413_v3, %v409_v2  ;;  %v415_v13 = vld [vmem:[#allocation3 + $0x140] sm:$0xff] }
  0x38   :  { %198 = vmatprep.mubr.f32.mxu0 %v2839_v0  ;;  %311 = vmatprep.mubr.f32.mxu1 %v2839_v0  ;;  %v422_v9 = vld [vmem:[#allocation3 + $0x178] sm:$0xff]  ;;  %v419_v14 = vld [vmem:[#allocation3 + $0x160] sm:$0xff]  ;;  %v56_v16 = vld [vmem:[%s3385_s0 + $0x28] sm:$0xff]  ;;  %v3008_v17 = vpack.c.bf16 %v420_v6, %v416_v5 }
  0x39   :  { %2063 = vmatpush1.bf16.msra.mxu0 %v2978_v56  ;;  %2095 = vmatpush1.bf16.msra.mxu1 %v2982_v60  ;;  %v417_v18 = vld [vmem:[#allocation3 + $0x150] sm:$0xff]  ;;  %v3012_v21 = vpack.c.bf16 %v422_v9, %v418_v8  ;;  %v424_v22 = vld [vmem:[#allocation3 + $0x188] sm:$0xff]  ;;  %v3016_v26 = vpack.c.bf16 %v419_v14, %v415_v13  ;;  %v426_v27 = vld [vmem:[#allocation3 + $0x198] sm:$0xff] }
  0x3a   :  { %1959 = vmatmul.mubr.msk.f32.gmra.mrb[8].mxu0 %vm85_vm0, %v55_v63  ;;  %1967 = vmatmul.mubr.msk.f32.gmra.mrb[8].mxu1 %vm85_vm0, %v55_v63  ;;  %v421_v20 = vld [vmem:[#allocation3 + $0x170] sm:$0xff]  ;;  %v428_v25 = vld [vmem:[#allocation3 + $0x1a8] sm:$0xff]  ;;  %v430_v29 = vld [vmem:[#allocation3 + $0x1b8] sm:$0xff]  ;;  %v66_v63 = vshrl.u32 %v65_v62, 7 }
  0x3b   :  { %2065 = vmatprep.subr.bf16.mxu0 %v2989_v1  ;;  %2097 = vmatprep.subr.bf16.mxu1 %v2993_v4  ;;  %v3020_v30 = vpack.c.bf16 %v421_v20, %v417_v18  ;;  %v423_v31 = vld [vmem:[#allocation3 + $0x180] sm:$0xff]  ;;  %v57_v34 = vld [vmem:[%s3385_s0 + $0x30] sm:$0xff]  ;;  %v3027_v35 = vpack.c.bf16 %v428_v25, %v424_v22  ;;  %v3031_v40 = vpack.c.bf16 %v430_v29, %v426_v27  ;;  %v432_v42 = vld [vmem:[#allocation3 + $0x1c8] sm:$0xff] }
  0x3c   :  { %204 = vmatprep.mubr.f32.mxu0 %v2839_v0  ;;  %317 = vmatprep.mubr.f32.mxu1 %v2839_v0  ;;  %v427_v33 = vld [vmem:[#allocation3 + $0x1a0] sm:$0xff]  ;;  %v425_v38 = vld [vmem:[#allocation3 + $0x190] sm:$0xff]  ;;  %v436_v43 = vld [vmem:[#allocation3 + $0x1e8] sm:$0xff]  ;;  %v67_v2 = vsub.s32 0, %v66_v63  ;;  %v71_v5 = vsub.s32 1, %v66_v63  ;;  %v75_v13 = vsub.s32 2, %v66_v63 }
  0x3d   :  { %2067 = vmatpush1.bf16.msra.mxu0 %v2997_v7  ;;  %2099 = vmatpush1.bf16.msra.mxu1 %v3001_v12  ;;  %v429_v39 = vld [vmem:[#allocation3 + $0x1b0] sm:$0xff]  ;;  %v3035_v44 = vpack.c.bf16 %v427_v33, %v423_v31  ;;  %v434_v46 = vld [vmem:[#allocation3 + $0x1d8] sm:$0xff]  ;;  %v431_v50 = vld [vmem:[#allocation3 + $0x1c0] sm:$0xff]  ;;  %v3046_v54 = vpack.c.bf16 %v436_v43, %v432_v42  ;;  %v79_v31 = vsub.s32 3, %v66_v63 }
  0x3e   :  { %1960 = vmatmul.mubr.msk.f32.gmra.mrb[10].mxu0 %vm85_vm0, %v56_v16  ;;  %1968 = vmatmul.mubr.msk.f32.gmra.mrb[10].mxu1 %vm85_vm0, %v56_v16  ;;  %v438_v47 = vld [vmem:[#allocation3 + $0x1f8] sm:$0xff]  ;;  %v3039_v48 = vpack.c.bf16 %v429_v39, %v425_v38  ;;  %v435_v51 = vld [vmem:[#allocation3 + $0x1e0] sm:$0xff]  ;;  %v433_v55 = vld [vmem:[#allocation3 + $0x1d0] sm:$0xff] }
  0x3f   :  { %2069 = vmatprep.subr.bf16.mxu0 %v3008_v17  ;;  %2101 = vmatprep.subr.bf16.mxu1 %v3012_v21  ;;  %v58_v52 = vld [vmem:[%s3385_s0 + $0x38] sm:$0xff]  ;;  %v437_v57 = vld [vmem:[#allocation3 + $0x1f0] sm:$0xff]  ;;  %v3050_v58 = vpack.c.bf16 %v438_v47, %v434_v46  ;;  %v3054_v59 = vpack.c.bf16 %v435_v51, %v431_v50  ;;  %v63_v3 = vld [vmem:[%s3388_s3] sm:$0xf] }
  0x40   :  { %210 = vmatprep.mubr.f32.mxu0 %v2839_v0  ;;  %323 = vmatprep.mubr.f32.mxu1 %v2839_v0  ;;  %v3058_v61 = vpack.c.bf16 %v437_v57, %v433_v55  ;;  %v3108_v6 = vrot.slane %v63_v3, %v67_v2  ;;  %v3110_v8 = vrot.slane %v63_v3, %v71_v5 }
  0x41   :  { %2071 = vmatpush1.bf16.msra.mxu0 %v3016_v26  ;;  %2103 = vmatpush1.bf16.msra.mxu1 %v3020_v30  ;;  %v3114_v27 = vrot.slane %v63_v3, %v75_v13 }
  0x42   :  { %1961 = vmatmul.mubr.msk.f32.gmra.mrb[12].mxu0 %vm85_vm0, %v57_v34  ;;  %1969 = vmatmul.mubr.msk.f32.gmra.mrb[12].mxu1 %vm85_vm0, %v57_v34  ;;  %v3117_v34 = vrot.slane %v63_v3, %v79_v31 }
  0x43   :  { %2073 = vmatprep.subr.bf16.mxu0 %v3027_v35  ;;  %2105 = vmatprep.subr.bf16.mxu1 %v3031_v40 }
  0x44   :  { %216 = vmatprep.mubr.f32.mxu0 %v2839_v0  ;;  %329 = vmatprep.mubr.f32.mxu1 %v2839_v0 }
  0x45   :  { %2075 = vmatpush1.bf16.msra.mxu0 %v3035_v44  ;;  %2107 = vmatpush1.bf16.msra.mxu1 %v3039_v48 }
  0x46   :  { %1962 = vmatmul.mubr.msk.f32.gmra.mrb[14].mxu0 %vm85_vm0, %v58_v52  ;;  %1970 = vmatmul.mubr.msk.f32.gmra.mrb[14].mxu1 %vm85_vm0, %v58_v52 }
  0x47   :  { %2077 = vmatprep.subr.bf16.mxu0 %v3046_v54  ;;  %2109 = vmatprep.subr.bf16.mxu1 %v3050_v58 }
  0x48   :  { %503 = vmatprep.mubr.f32.mxu0 %v2839_v0  ;;  %574 = vmatprep.mubr.f32.mxu1 %v2839_v0 }
  0x49   :  { %2079 = vmatpush1.bf16.msra.mxu0 %v3054_v59  ;;  %2111 = vmatpush1.bf16.msra.mxu1 %v3058_v61 }
  0x4a   :  { %2113 = vmatprep.subr.bf16.mxu0 %v2920_v10  ;;  %2145 = vmatprep.subr.bf16.mxu1 %v2922_v11 }
  0x4c   :  { %504 = vmatmul.mubr.f32.vlgmr.msra.gmra.mrb[0].mxu0 %v2839_v0  ;;  %575 = vmatmul.mubr.f32.vlgmr.msra.gmra.mrb[0].mxu1 %v2839_v0 }
  0x4d   :  { %2115 = vmatpush1.bf16.msra.mxu0 %v2924_v15  ;;  %2147 = vmatpush1.bf16.msra.mxu1 %v2933_v19 }
  0x4e   :  { %2117 = vmatprep.subr.bf16.mxu0 %v2936_v23  ;;  %2149 = vmatprep.subr.bf16.mxu1 %v2938_v24 }
  0x4f   :  { %680 = vmatprep.mubr.f32.mxu0 %v2839_v0  ;;  %751 = vmatprep.mubr.f32.mxu1 %v2839_v0 }
  0x51   :  { %2119 = vmatpush1.bf16.msra.mxu0 %v2942_v28  ;;  %2151 = vmatpush1.bf16.msra.mxu1 %v2949_v32 }
  0x52   :  { %2121 = vmatprep.subr.bf16.mxu0 %v2953_v36  ;;  %2153 = vmatprep.subr.bf16.mxu1 %v2955_v37 }
  0x55   :  { %2123 = vmatpush1.bf16.msra.mxu0 %v2959_v41  ;;  %2155 = vmatpush1.bf16.msra.mxu1 %v2966_v45 }
  0x56   :  { %2125 = vmatprep.subr.bf16.mxu0 %v2970_v49  ;;  %2157 = vmatprep.subr.bf16.mxu1 %v2974_v53 }
  0x59   :  { %2127 = vmatpush1.bf16.msra.mxu0 %v2978_v56  ;;  %2159 = vmatpush1.bf16.msra.mxu1 %v2982_v60 }
  0x5a   :  { %2129 = vmatprep.subr.bf16.mxu0 %v2989_v1  ;;  %2161 = vmatprep.subr.bf16.mxu1 %v2993_v4 }
  0x5d   :  { %2131 = vmatpush1.bf16.msra.mxu0 %v2997_v7  ;;  %2163 = vmatpush1.bf16.msra.mxu1 %v3001_v12 }
  0x5e   :  { %2133 = vmatprep.subr.bf16.mxu0 %v3008_v17  ;;  %2165 = vmatprep.subr.bf16.mxu1 %v3012_v21 }
  0x61   :  { %2135 = vmatpush1.bf16.msra.mxu0 %v3016_v26  ;;  %2167 = vmatpush1.bf16.msra.mxu1 %v3020_v30 }
  0x62   :  { %2137 = vmatprep.subr.bf16.mxu0 %v3027_v35  ;;  %2169 = vmatprep.subr.bf16.mxu1 %v3031_v40 }
  0x65   :  { %2139 = vmatpush1.bf16.msra.mxu0 %v3035_v44  ;;  %2171 = vmatpush1.bf16.msra.mxu1 %v3039_v48 }
  0x66   :  { %2141 = vmatprep.subr.bf16.mxu0 %v3046_v54  ;;  %2173 = vmatprep.subr.bf16.mxu1 %v3050_v58 }
  0x69   :  { %2143 = vmatpush1.bf16.msra.mxu0 %v3054_v59  ;;  %2175 = vmatpush1.bf16.msra.mxu1 %v3058_v61 }
  0x6a   :  { %2177 = vmatprep.subr.bf16.mxu0 %v2920_v10  ;;  %2209 = vmatprep.subr.bf16.mxu1 %v2922_v11 }
 0x11f   :  { %v505_v9 = vpop.f32.mrb[0].mxu0  ;;  %v576_v16 = vpop.f32.mrb[0].mxu1 }
 0x120   :  { %v2584_v14 = vadd.f32 %v505_v9, %v3108_v6  ;;  %v507_v18 = vpop.f32.mrb[1].mxu0  ;;  %v578_v22 = vpop.f32.mrb[1].mxu1  ;;  %v2600_v33 = vadd.f32 %v576_v16, %v3114_v27 }
 0x121   :  { %v2585_v20 = vadd.f32 %v507_v18, %v3110_v8  ;;  %v2601_v39 = vadd.f32 %v578_v22, %v3117_v34 }
 0x122   :  { %v1971_v25 = vmul.f32 -1.442695, %v2584_v14  ;;  %v1973_v38 = vmul.f32 -1.442695, %v2600_v33 }
 0x123   :  { %v1972_v29 = vmul.f32 -1.442695, %v2585_v20 }
 0x124   :  { %2657 = vpow2.f32 %v1971_v25 }
 0x125   :  { %2659 = vpow2.f32 %v1972_v29 }
 0x126   :  { %2661 = vpow2.f32 %v1973_v38 }
 0x127   :  { %2663 = vtanh.f32 %v2601_v39 }
 0x12e   :  { %v2658_v42 = vpop.eup %2657 }
 0x12f   :  { %v594_v43 = vadd.f32 1.0, %v2658_v42  ;;  %v2660_v46 = vpop.eup %2659 }
 0x130   :  { %v595_v47 = vadd.f32 1.0, %v2660_v46  ;;  %v2662_v50 = vpop.eup %2661 }
 0x131   :  { %2665 = vrcp.f32 %v594_v43  ;;  %v2664_v51 = vpop.eup %2663  ;;  %v596_v62 = vadd.f32 1.0, %v2662_v50 }
 0x132   :  { %2667 = vrcp.f32 %v595_v47 }
 0x133   :  { %2669 = vrcp.f32 %v596_v62 }
 0x13b   :  { %v2666_v52 = vpop.eup %2665 }
 0x13c   :  { %v605_v55 = vmul.f32 %v2666_v52, %v2664_v51  ;;  %v2668_v57 = vpop.eup %2667 }
 0x13d   :  { %v604_v63 = vmul.f32 0.0, %v2668_v57  ;;  %v2670_v3 = vpop.eup %2669 }
 0x13f   :  { %v3120_v2 = vadd.f32 %v605_v55, %v604_v63 }
 0x141   :  { %2671 = vtanh.f32 %v3120_v2 }
 0x14b   :  { %v2672_v5 = vpop.eup %2671 }
 0x14c   :  { %v608_v9 = vmul.f32 %v2672_v5, %v2670_v3 }
 0x14e   :  { %681 = vmatmul.mubr.f32.vlgmr.msra.gmra.mrb[2].mxu0 %v608_v9  ;;  %752 = vmatmul.mubr.f32.vlgmr.msra.gmra.mrb[2].mxu1 %v608_v9 }
 0x14f   :  { %2179 = vmatpush1.bf16.msra.mxu0 %v2924_v15  ;;  %2211 = vmatpush1.bf16.msra.mxu1 %v2933_v19 }
 0x150   :  { %2181 = vmatprep.subr.bf16.mxu0 %v2936_v23  ;;  %2213 = vmatprep.subr.bf16.mxu1 %v2938_v24 }
 0x151   :  { %857 = vmatprep.mubr.f32.mxu0 %v2839_v0  ;;  %928 = vmatprep.mubr.f32.mxu1 %v2839_v0 }
 0x153   :  { %2183 = vmatpush1.bf16.msra.mxu0 %v2942_v28  ;;  %2215 = vmatpush1.bf16.msra.mxu1 %v2949_v32 }
 0x154   :  { %2185 = vmatprep.subr.bf16.mxu0 %v2953_v36  ;;  %2217 = vmatprep.subr.bf16.mxu1 %v2955_v37 }
 0x157   :  { %2187 = vmatpush1.bf16.msra.mxu0 %v2959_v41  ;;  %2219 = vmatpush1.bf16.msra.mxu1 %v2966_v45 }
 0x158   :  { %2189 = vmatprep.subr.bf16.mxu0 %v2970_v49  ;;  %2221 = vmatprep.subr.bf16.mxu1 %v2974_v53 }
 0x15b   :  { %2191 = vmatpush1.bf16.msra.mxu0 %v2978_v56  ;;  %2223 = vmatpush1.bf16.msra.mxu1 %v2982_v60 }
 0x15c   :  { %2193 = vmatprep.subr.bf16.mxu0 %v2989_v1  ;;  %2225 = vmatprep.subr.bf16.mxu1 %v2993_v4 }
 0x15f   :  { %2195 = vmatpush1.bf16.msra.mxu0 %v2997_v7  ;;  %2227 = vmatpush1.bf16.msra.mxu1 %v3001_v12 }
 0x160   :  { %2197 = vmatprep.subr.bf16.mxu0 %v3008_v17  ;;  %2229 = vmatprep.subr.bf16.mxu1 %v3012_v21 }
 0x163   :  { %2199 = vmatpush1.bf16.msra.mxu0 %v3016_v26  ;;  %2231 = vmatpush1.bf16.msra.mxu1 %v3020_v30 }
 0x164   :  { %2201 = vmatprep.subr.bf16.mxu0 %v3027_v35  ;;  %2233 = vmatprep.subr.bf16.mxu1 %v3031_v40 }
 0x167   :  { %2203 = vmatpush1.bf16.msra.mxu0 %v3035_v44  ;;  %2235 = vmatpush1.bf16.msra.mxu1 %v3039_v48 }
 0x168   :  { %2205 = vmatprep.subr.bf16.mxu0 %v3046_v54  ;;  %2237 = vmatprep.subr.bf16.mxu1 %v3050_v58 }
 0x16b   :  { %2207 = vmatpush1.bf16.msra.mxu0 %v3054_v59  ;;  %2239 = vmatpush1.bf16.msra.mxu1 %v3058_v61 }
 0x16c   :  { %2241 = vmatprep.subr.bf16.mxu0 %v2920_v10  ;;  %2273 = vmatprep.subr.bf16.mxu1 %v2922_v11 }
 0x221   :  { %v682_v13 = vpop.f32.mrb[2].mxu0  ;;  %v753_v14 = vpop.f32.mrb[2].mxu1 }
 0x222   :  { %v2586_v16 = vadd.f32 %v682_v13, %v3108_v6  ;;  %v684_v18 = vpop.f32.mrb[3].mxu0  ;;  %v755_v20 = vpop.f32.mrb[3].mxu1  ;;  %v2602_v31 = vadd.f32 %v753_v14, %v3114_v27 }
 0x223   :  { %v2587_v22 = vadd.f32 %v684_v18, %v3110_v8  ;;  %v2603_v33 = vadd.f32 %v755_v20, %v3117_v34 }
 0x224   :  { %v1974_v25 = vmul.f32 -1.442695, %v2586_v16  ;;  %v1976_v38 = vmul.f32 -1.442695, %v2602_v31 }
 0x225   :  { %v1975_v29 = vmul.f32 -1.442695, %v2587_v22 }
 0x226   :  { %2673 = vpow2.f32 %v1974_v25 }
 0x227   :  { %2675 = vpow2.f32 %v1975_v29 }
 0x228   :  { %2677 = vtanh.f32 %v2603_v33 }
 0x229   :  { %2679 = vpow2.f32 %v1976_v38 }
 0x230   :  { %v2674_v39 = vpop.eup %2673 }
 0x231   :  { %v771_v42 = vadd.f32 1.0, %v2674_v39  ;;  %v2676_v43 = vpop.eup %2675 }
 0x232   :  { %v772_v46 = vadd.f32 1.0, %v2676_v43  ;;  %v2678_v47 = vpop.eup %2677 }
 0x233   :  { %2681 = vrcp.f32 %v771_v42  ;;  %v2680_v50 = vpop.eup %2679 }
 0x234   :  { %2683 = vrcp.f32 %v772_v46  ;;  %v773_v57 = vadd.f32 1.0, %v2680_v50 }
 0x236   :  { %2685 = vrcp.f32 %v773_v57 }
 0x23d   :  { %v2682_v51 = vpop.eup %2681 }
 0x23e   :  { %v782_v52 = vmul.f32 %v2682_v51, %v2678_v47  ;;  %v2684_v55 = vpop.eup %2683 }
 0x23f   :  { %v781_v62 = vmul.f32 %v2684_v55, %v3120_v2 }
 0x240   :  { %v2686_v3 = vpop.eup %2685 }
 0x241   :  { %v3162_v63 = vadd.f32 %v782_v52, %v781_v62 }
 0x243   :  { %2687 = vtanh.f32 %v3162_v63 }
 0x24d   :  { %v2688_v5 = vpop.eup %2687 }
 0x24e   :  { %v785_v9 = vmul.f32 %v2688_v5, %v2686_v3 }
 0x250   :  { %858 = vmatmul.mubr.f32.vlgmr.msra.gmra.mrb[4].mxu0 %v785_v9  ;;  %929 = vmatmul.mubr.f32.vlgmr.msra.gmra.mrb[4].mxu1 %v785_v9 }
 0x251   :  { %2243 = vmatpush1.bf16.msra.mxu0 %v2924_v15  ;;  %2275 = vmatpush1.bf16.msra.mxu1 %v2933_v19 }
 0x252   :  { %2245 = vmatprep.subr.bf16.mxu0 %v2936_v23  ;;  %2277 = vmatprep.subr.bf16.mxu1 %v2938_v24 }
 0x253   :  { %1034 = vmatprep.mubr.f32.mxu0 %v2839_v0  ;;  %1105 = vmatprep.mubr.f32.mxu1 %v2839_v0 }
 0x255   :  { %2247 = vmatpush1.bf16.msra.mxu0 %v2942_v28  ;;  %2279 = vmatpush1.bf16.msra.mxu1 %v2949_v32 }
 0x256   :  { %2249 = vmatprep.subr.bf16.mxu0 %v2953_v36  ;;  %2281 = vmatprep.subr.bf16.mxu1 %v2955_v37 }
 0x259   :  { %2251 = vmatpush1.bf16.msra.mxu0 %v2959_v41  ;;  %2283 = vmatpush1.bf16.msra.mxu1 %v2966_v45 }
 0x25a   :  { %2253 = vmatprep.subr.bf16.mxu0 %v2970_v49  ;;  %2285 = vmatprep.subr.bf16.mxu1 %v2974_v53 }
 0x25d   :  { %2255 = vmatpush1.bf16.msra.mxu0 %v2978_v56  ;;  %2287 = vmatpush1.bf16.msra.mxu1 %v2982_v60 }
 0x25e   :  { %2257 = vmatprep.subr.bf16.mxu0 %v2989_v1  ;;  %2289 = vmatprep.subr.bf16.mxu1 %v2993_v4 }
 0x261   :  { %2259 = vmatpush1.bf16.msra.mxu0 %v2997_v7  ;;  %2291 = vmatpush1.bf16.msra.mxu1 %v3001_v12 }
 0x262   :  { %2261 = vmatprep.subr.bf16.mxu0 %v3008_v17  ;;  %2293 = vmatprep.subr.bf16.mxu1 %v3012_v21 }
 0x265   :  { %2263 = vmatpush1.bf16.msra.mxu0 %v3016_v26  ;;  %2295 = vmatpush1.bf16.msra.mxu1 %v3020_v30 }
 0x266   :  { %2265 = vmatprep.subr.bf16.mxu0 %v3027_v35  ;;  %2297 = vmatprep.subr.bf16.mxu1 %v3031_v40 }
 0x269   :  { %2267 = vmatpush1.bf16.msra.mxu0 %v3035_v44  ;;  %2299 = vmatpush1.bf16.msra.mxu1 %v3039_v48 }
 0x26a   :  { %2269 = vmatprep.subr.bf16.mxu0 %v3046_v54  ;;  %2301 = vmatprep.subr.bf16.mxu1 %v3050_v58 }
 0x26d   :  { %2271 = vmatpush1.bf16.msra.mxu0 %v3054_v59  ;;  %2303 = vmatpush1.bf16.msra.mxu1 %v3058_v61 }
 0x26e   :  { %2305 = vmatprep.subr.bf16.mxu0 %v2920_v10  ;;  %2337 = vmatprep.subr.bf16.mxu1 %v2922_v11 }
 0x323   :  { %v859_v2 = vpop.f32.mrb[4].mxu0  ;;  %v930_v13 = vpop.f32.mrb[4].mxu1 }
 0x324   :  { %v2588_v14 = vadd.f32 %v859_v2, %v3108_v6  ;;  %v861_v16 = vpop.f32.mrb[5].mxu0  ;;  %v932_v18 = vpop.f32.mrb[5].mxu1  ;;  %v2604_v29 = vadd.f32 %v930_v13, %v3114_v27 }
 0x325   :  { %v2589_v20 = vadd.f32 %v861_v16, %v3110_v8  ;;  %v2605_v31 = vadd.f32 %v932_v18, %v3117_v34 }
 0x326   :  { %v1977_v22 = vmul.f32 -1.442695, %v2588_v14  ;;  %v1979_v33 = vmul.f32 -1.442695, %v2604_v29 }
 0x327   :  { %v1978_v25 = vmul.f32 -1.442695, %v2589_v20 }
 0x328   :  { %2689 = vpow2.f32 %v1977_v22 }
 0x329   :  { %2691 = vpow2.f32 %v1978_v25 }
 0x32a   :  { %2693 = vtanh.f32 %v2605_v31 }
 0x32b   :  { %2695 = vpow2.f32 %v1979_v33 }
 0x332   :  { %v2690_v38 = vpop.eup %2689 }
 0x333   :  { %v948_v39 = vadd.f32 1.0, %v2690_v38  ;;  %v2692_v42 = vpop.eup %2691 }
 0x334   :  { %v949_v43 = vadd.f32 1.0, %v2692_v42  ;;  %v2694_v46 = vpop.eup %2693 }
 0x335   :  { %2697 = vrcp.f32 %v948_v39  ;;  %v2696_v47 = vpop.eup %2695 }
 0x336   :  { %2699 = vrcp.f32 %v949_v43  ;;  %v950_v55 = vadd.f32 1.0, %v2696_v47 }
 0x338   :  { %2701 = vrcp.f32 %v950_v55 }
 0x33f   :  { %v2698_v50 = vpop.eup %2697 }
 0x340   :  { %v959_v51 = vmul.f32 %v2698_v50, %v2694_v46  ;;  %v2700_v52 = vpop.eup %2699 }
 0x341   :  { %v958_v57 = vmul.f32 %v2700_v52, %v3162_v63 }
 0x342   :  { %v2702_v3 = vpop.eup %2701 }
 0x343   :  { %v3204_v62 = vadd.f32 %v959_v51, %v958_v57 }
 0x345   :  { %2703 = vtanh.f32 %v3204_v62 }
 0x34f   :  { %v2704_v5 = vpop.eup %2703 }
 0x350   :  { %v962_v9 = vmul.f32 %v2704_v5, %v2702_v3 }
 0x352   :  { %1035 = vmatmul.mubr.f32.vlgmr.msra.gmra.mrb[6].mxu0 %v962_v9  ;;  %1106 = vmatmul.mubr.f32.vlgmr.msra.gmra.mrb[6].mxu1 %v962_v9 }
 0x353   :  { %2307 = vmatpush1.bf16.msra.mxu0 %v2924_v15  ;;  %2339 = vmatpush1.bf16.msra.mxu1 %v2933_v19 }
 0x354   :  { %2309 = vmatprep.subr.bf16.mxu0 %v2936_v23  ;;  %2341 = vmatprep.subr.bf16.mxu1 %v2938_v24 }
 0x355   :  { %1211 = vmatprep.mubr.f32.mxu0 %v2839_v0  ;;  %1282 = vmatprep.mubr.f32.mxu1 %v2839_v0 }
 0x357   :  { %2311 = vmatpush1.bf16.msra.mxu0 %v2942_v28  ;;  %2343 = vmatpush1.bf16.msra.mxu1 %v2949_v32 }
 0x358   :  { %2313 = vmatprep.subr.bf16.mxu0 %v2953_v36  ;;  %2345 = vmatprep.subr.bf16.mxu1 %v2955_v37 }
 0x35b   :  { %2315 = vmatpush1.bf16.msra.mxu0 %v2959_v41  ;;  %2347 = vmatpush1.bf16.msra.mxu1 %v2966_v45 }
 0x35c   :  { %2317 = vmatprep.subr.bf16.mxu0 %v2970_v49  ;;  %2349 = vmatprep.subr.bf16.mxu1 %v2974_v53 }
 0x35f   :  { %2319 = vmatpush1.bf16.msra.mxu0 %v2978_v56  ;;  %2351 = vmatpush1.bf16.msra.mxu1 %v2982_v60 }
 0x360   :  { %2321 = vmatprep.subr.bf16.mxu0 %v2989_v1  ;;  %2353 = vmatprep.subr.bf16.mxu1 %v2993_v4 }
 0x363   :  { %2323 = vmatpush1.bf16.msra.mxu0 %v2997_v7  ;;  %2355 = vmatpush1.bf16.msra.mxu1 %v3001_v12 }
 0x364   :  { %2325 = vmatprep.subr.bf16.mxu0 %v3008_v17  ;;  %2357 = vmatprep.subr.bf16.mxu1 %v3012_v21 }
 0x367   :  { %2327 = vmatpush1.bf16.msra.mxu0 %v3016_v26  ;;  %2359 = vmatpush1.bf16.msra.mxu1 %v3020_v30 }
 0x368   :  { %2329 = vmatprep.subr.bf16.mxu0 %v3027_v35  ;;  %2361 = vmatprep.subr.bf16.mxu1 %v3031_v40 }
 0x36b   :  { %2331 = vmatpush1.bf16.msra.mxu0 %v3035_v44  ;;  %2363 = vmatpush1.bf16.msra.mxu1 %v3039_v48 }
 0x36c   :  { %2333 = vmatprep.subr.bf16.mxu0 %v3046_v54  ;;  %2365 = vmatprep.subr.bf16.mxu1 %v3050_v58 }
 0x36f   :  { %2335 = vmatpush1.bf16.msra.mxu0 %v3054_v59  ;;  %2367 = vmatpush1.bf16.msra.mxu1 %v3058_v61 }
 0x370   :  { %2369 = vmatprep.subr.bf16.mxu0 %v2920_v10  ;;  %2401 = vmatprep.subr.bf16.mxu1 %v2922_v11 }
 0x425   :  { %v1036_v63 = vpop.f32.mrb[6].mxu0  ;;  %v1107_v2 = vpop.f32.mrb[6].mxu1 }
 0x426   :  { %v2590_v13 = vadd.f32 %v1036_v63, %v3108_v6  ;;  %v1038_v14 = vpop.f32.mrb[7].mxu0  ;;  %v1109_v16 = vpop.f32.mrb[7].mxu1  ;;  %v2606_v25 = vadd.f32 %v1107_v2, %v3114_v27 }
 0x427   :  { %v2591_v18 = vadd.f32 %v1038_v14, %v3110_v8  ;;  %v2607_v29 = vadd.f32 %v1109_v16, %v3117_v34 }
 0x428   :  { %v1980_v20 = vmul.f32 -1.442695, %v2590_v13  ;;  %v1982_v31 = vmul.f32 -1.442695, %v2606_v25 }
 0x429   :  { %v1981_v22 = vmul.f32 -1.442695, %v2591_v18 }
 0x42a   :  { %2705 = vpow2.f32 %v1980_v20 }
 0x42b   :  { %2707 = vpow2.f32 %v1981_v22 }
 0x42c   :  { %2709 = vtanh.f32 %v2607_v29 }
 0x42d   :  { %2711 = vpow2.f32 %v1982_v31 }
 0x434   :  { %v2706_v33 = vpop.eup %2705 }
 0x435   :  { %v1125_v38 = vadd.f32 1.0, %v2706_v33  ;;  %v2708_v39 = vpop.eup %2707 }
 0x436   :  { %v1126_v42 = vadd.f32 1.0, %v2708_v39  ;;  %v2710_v43 = vpop.eup %2709 }
 0x437   :  { %2713 = vrcp.f32 %v1125_v38  ;;  %v2712_v46 = vpop.eup %2711 }
 0x438   :  { %2715 = vrcp.f32 %v1126_v42  ;;  %v1127_v52 = vadd.f32 1.0, %v2712_v46 }
 0x43a   :  { %2717 = vrcp.f32 %v1127_v52 }
 0x441   :  { %v2714_v47 = vpop.eup %2713 }
 0x442   :  { %v1136_v50 = vmul.f32 %v2714_v47, %v2710_v43  ;;  %v2716_v51 = vpop.eup %2715 }
 0x443   :  { %v1135_v55 = vmul.f32 %v2716_v51, %v3204_v62 }
 0x444   :  { %v2718_v3 = vpop.eup %2717 }
 0x445   :  { %v3246_v57 = vadd.f32 %v1136_v50, %v1135_v55 }
 0x447   :  { %2719 = vtanh.f32 %v3246_v57 }
 0x451   :  { %v2720_v5 = vpop.eup %2719 }
 0x452   :  { %v1139_v9 = vmul.f32 %v2720_v5, %v2718_v3 }
 0x454   :  { %1212 = vmatmul.mubr.f32.vlgmr.msra.gmra.mrb[8].mxu0 %v1139_v9  ;;  %1283 = vmatmul.mubr.f32.vlgmr.msra.gmra.mrb[8].mxu1 %v1139_v9 }
 0x455   :  { %2371 = vmatpush1.bf16.msra.mxu0 %v2924_v15  ;;  %2403 = vmatpush1.bf16.msra.mxu1 %v2933_v19 }
 0x456   :  { %2373 = vmatprep.subr.bf16.mxu0 %v2936_v23  ;;  %2405 = vmatprep.subr.bf16.mxu1 %v2938_v24 }
 0x457   :  { %1388 = vmatprep.mubr.f32.mxu0 %v2839_v0  ;;  %1459 = vmatprep.mubr.f32.mxu1 %v2839_v0 }
 0x459   :  { %2375 = vmatpush1.bf16.msra.mxu0 %v2942_v28  ;;  %2407 = vmatpush1.bf16.msra.mxu1 %v2949_v32 }
 0x45a   :  { %2377 = vmatprep.subr.bf16.mxu0 %v2953_v36  ;;  %2409 = vmatprep.subr.bf16.mxu1 %v2955_v37 }
 0x45d   :  { %2379 = vmatpush1.bf16.msra.mxu0 %v2959_v41  ;;  %2411 = vmatpush1.bf16.msra.mxu1 %v2966_v45 }
 0x45e   :  { %2381 = vmatprep.subr.bf16.mxu0 %v2970_v49  ;;  %2413 = vmatprep.subr.bf16.mxu1 %v2974_v53 }
 0x461   :  { %2383 = vmatpush1.bf16.msra.mxu0 %v2978_v56  ;;  %2415 = vmatpush1.bf16.msra.mxu1 %v2982_v60 }
 0x462   :  { %2385 = vmatprep.subr.bf16.mxu0 %v2989_v1  ;;  %2417 = vmatprep.subr.bf16.mxu1 %v2993_v4 }
 0x465   :  { %2387 = vmatpush1.bf16.msra.mxu0 %v2997_v7  ;;  %2419 = vmatpush1.bf16.msra.mxu1 %v3001_v12 }
 0x466   :  { %2389 = vmatprep.subr.bf16.mxu0 %v3008_v17  ;;  %2421 = vmatprep.subr.bf16.mxu1 %v3012_v21 }
 0x469   :  { %2391 = vmatpush1.bf16.msra.mxu0 %v3016_v26  ;;  %2423 = vmatpush1.bf16.msra.mxu1 %v3020_v30 }
 0x46a   :  { %2393 = vmatprep.subr.bf16.mxu0 %v3027_v35  ;;  %2425 = vmatprep.subr.bf16.mxu1 %v3031_v40 }
 0x46d   :  { %2395 = vmatpush1.bf16.msra.mxu0 %v3035_v44  ;;  %2427 = vmatpush1.bf16.msra.mxu1 %v3039_v48 }
 0x46e   :  { %2397 = vmatprep.subr.bf16.mxu0 %v3046_v54  ;;  %2429 = vmatprep.subr.bf16.mxu1 %v3050_v58 }
 0x471   :  { %2399 = vmatpush1.bf16.msra.mxu0 %v3054_v59  ;;  %2431 = vmatpush1.bf16.msra.mxu1 %v3058_v61 }
 0x472   :  { %2433 = vmatprep.subr.bf16.mxu0 %v2920_v10  ;;  %2465 = vmatprep.subr.bf16.mxu1 %v2922_v11 }
 0x527   :  { %v1213_v62 = vpop.f32.mrb[8].mxu0  ;;  %v1284_v63 = vpop.f32.mrb[8].mxu1 }
 0x528   :  { %v2592_v2 = vadd.f32 %v1213_v62, %v3108_v6  ;;  %v1215_v13 = vpop.f32.mrb[9].mxu0  ;;  %v1286_v14 = vpop.f32.mrb[9].mxu1  ;;  %v2608_v22 = vadd.f32 %v1284_v63, %v3114_v27 }
 0x529   :  { %v2593_v16 = vadd.f32 %v1215_v13, %v3110_v8  ;;  %v2609_v25 = vadd.f32 %v1286_v14, %v3117_v34 }
 0x52a   :  { %v1983_v18 = vmul.f32 -1.442695, %v2592_v2  ;;  %v1985_v29 = vmul.f32 -1.442695, %v2608_v22 }
 0x52b   :  { %v1984_v20 = vmul.f32 -1.442695, %v2593_v16 }
 0x52c   :  { %2721 = vpow2.f32 %v1983_v18 }
 0x52d   :  { %2723 = vpow2.f32 %v1984_v20 }
 0x52e   :  { %2725 = vtanh.f32 %v2609_v25 }
 0x52f   :  { %2727 = vpow2.f32 %v1985_v29 }
 0x536   :  { %v2722_v31 = vpop.eup %2721 }
 0x537   :  { %v1302_v33 = vadd.f32 1.0, %v2722_v31  ;;  %v2724_v38 = vpop.eup %2723 }
 0x538   :  { %v1303_v39 = vadd.f32 1.0, %v2724_v38  ;;  %v2726_v42 = vpop.eup %2725 }
 0x539   :  { %2729 = vrcp.f32 %v1302_v33  ;;  %v2728_v43 = vpop.eup %2727 }
 0x53a   :  { %2731 = vrcp.f32 %v1303_v39  ;;  %v1304_v51 = vadd.f32 1.0, %v2728_v43 }
 0x53c   :  { %2733 = vrcp.f32 %v1304_v51 }
 0x543   :  { %v2730_v46 = vpop.eup %2729 }
 0x544   :  { %v1313_v47 = vmul.f32 %v2730_v46, %v2726_v42  ;;  %v2732_v50 = vpop.eup %2731 }
 0x545   :  { %v1312_v52 = vmul.f32 %v2732_v50, %v3246_v57 }
 0x546   :  { %v2734_v3 = vpop.eup %2733 }
 0x547   :  { %v3288_v55 = vadd.f32 %v1313_v47, %v1312_v52 }
 0x549   :  { %2735 = vtanh.f32 %v3288_v55 }
 0x553   :  { %v2736_v5 = vpop.eup %2735 }
 0x554   :  { %v1316_v9 = vmul.f32 %v2736_v5, %v2734_v3  ;;  %v1851_v5 = vld [vmem:[#allocation5 + $0x18] sm:$0xff] }
 0x556   :  { %1389 = vmatmul.mubr.f32.vlgmr.msra.gmra.mrb[10].mxu0 %v1316_v9  ;;  %1460 = vmatmul.mubr.f32.vlgmr.msra.gmra.mrb[10].mxu1 %v1316_v9 }
 0x557   :  { %2435 = vmatpush1.bf16.msra.mxu0 %v2924_v15  ;;  %2467 = vmatpush1.bf16.msra.mxu1 %v2933_v19 }
 0x558   :  { %2437 = vmatprep.subr.bf16.mxu0 %v2936_v23  ;;  %2469 = vmatprep.subr.bf16.mxu1 %v2938_v24 }
 0x559   :  { %1565 = vmatprep.mubr.f32.mxu0 %v2839_v0  ;;  %1636 = vmatprep.mubr.f32.mxu1 %v2839_v0 }
 0x55b   :  { %2439 = vmatpush1.bf16.msra.mxu0 %v2942_v28  ;;  %2471 = vmatpush1.bf16.msra.mxu1 %v2949_v32 }
 0x55c   :  { %2441 = vmatprep.subr.bf16.mxu0 %v2953_v36  ;;  %2473 = vmatprep.subr.bf16.mxu1 %v2955_v37 }
 0x55f   :  { %2443 = vmatpush1.bf16.msra.mxu0 %v2959_v41  ;;  %2475 = vmatpush1.bf16.msra.mxu1 %v2966_v45 }
 0x560   :  { %2445 = vmatprep.subr.bf16.mxu0 %v2970_v49  ;;  %2477 = vmatprep.subr.bf16.mxu1 %v2974_v53 }
 0x563   :  { %2447 = vmatpush1.bf16.msra.mxu0 %v2978_v56  ;;  %2479 = vmatpush1.bf16.msra.mxu1 %v2982_v60 }
 0x564   :  { %2449 = vmatprep.subr.bf16.mxu0 %v2989_v1  ;;  %2481 = vmatprep.subr.bf16.mxu1 %v2993_v4 }
 0x567   :  { %2451 = vmatpush1.bf16.msra.mxu0 %v2997_v7  ;;  %2483 = vmatpush1.bf16.msra.mxu1 %v3001_v12 }
 0x568   :  { %2453 = vmatprep.subr.bf16.mxu0 %v3008_v17  ;;  %2485 = vmatprep.subr.bf16.mxu1 %v3012_v21 }
 0x56b   :  { %2455 = vmatpush1.bf16.msra.mxu0 %v3016_v26  ;;  %2487 = vmatpush1.bf16.msra.mxu1 %v3020_v30 }
 0x56c   :  { %2457 = vmatprep.subr.bf16.mxu0 %v3027_v35  ;;  %2489 = vmatprep.subr.bf16.mxu1 %v3031_v40 }
 0x56f   :  { %2459 = vmatpush1.bf16.msra.mxu0 %v3035_v44  ;;  %2491 = vmatpush1.bf16.msra.mxu1 %v3039_v48 }
 0x570   :  { %2461 = vmatprep.subr.bf16.mxu0 %v3046_v54  ;;  %2493 = vmatprep.subr.bf16.mxu1 %v3050_v58 }
 0x573   :  { %2463 = vmatpush1.bf16.msra.mxu0 %v3054_v59  ;;  %2495 = vmatpush1.bf16.msra.mxu1 %v3058_v61 }
 0x574   :  { %2497 = vmatprep.subr.bf16.mxu0 %v2920_v10  ;;  %2529 = vmatprep.subr.bf16.mxu1 %v2922_v11 }
 0x629   :  { %v1390_v57 = vpop.f32.mrb[10].mxu0  ;;  %v1461_v62 = vpop.f32.mrb[10].mxu1 }
 0x62a   :  { %v2594_v63 = vadd.f32 %v1390_v57, %v3108_v6  ;;  %v1392_v2 = vpop.f32.mrb[11].mxu0  ;;  %v1463_v13 = vpop.f32.mrb[11].mxu1  ;;  %v2610_v20 = vadd.f32 %v1461_v62, %v3114_v27  ;;  %v1852_v57 = vld [vmem:[#allocation5 + $0x20] sm:$0xff]  ;;  %v1853_v62 = vld [vmem:[#allocation5 + $0x28] sm:$0xff] }
 0x62b   :  { %v2595_v14 = vadd.f32 %v1392_v2, %v3110_v8  ;;  %v2611_v22 = vadd.f32 %v1463_v13, %v3117_v34  ;;  %v1854_v2 = vld [vmem:[#allocation5 + $0x30] sm:$0xff]  ;;  %v1855_v13 = vld [vmem:[#allocation5 + $0x38] sm:$0xff] }
 0x62c   :  { %v1986_v16 = vmul.f32 -1.442695, %v2594_v63  ;;  %v1988_v25 = vmul.f32 -1.442695, %v2610_v20  ;;  %v2567_v63 = vpack.c.bf16 %v1853_v62, %v1852_v57 }
 0x62d   :  { %v1987_v18 = vmul.f32 -1.442695, %v2595_v14  ;;  %v2570_v14 = vpack.c.bf16 %v1855_v13, %v1854_v2 }
 0x62e   :  { %2737 = vpow2.f32 %v1986_v16  ;;  %v1856_v16 = vld [vmem:[#allocation5 + $0x40] sm:$0xff] }
 0x62f   :  { %2739 = vpow2.f32 %v1987_v18  ;;  %v1857_v18 = vld [vmem:[#allocation5 + $0x48] sm:$0xff] }
 0x630   :  { %2741 = vtanh.f32 %v2611_v22  ;;  %v2573_v20 = vpack.c.bf16 %v1857_v18, %v1856_v16  ;;  %v1858_v22 = vld [vmem:[#allocation5 + $0x50] sm:$0xff] }
 0x631   :  { %2743 = vpow2.f32 %v1988_v25  ;;  %v1859_v25 = vld [vmem:[#allocation5 + $0x58] sm:$0xff] }
 0x638   :  { %v2738_v10 = vpop.eup %2737 }
 0x639   :  { %v1479_v29 = vadd.f32 1.0, %v2738_v10  ;;  %v2740_v11 = vpop.eup %2739  ;;  %v2576_v10 = vpack.c.bf16 %v1859_v25, %v1858_v22 }
 0x63a   :  { %v1480_v31 = vadd.f32 1.0, %v2740_v11  ;;  %v2742_v33 = vpop.eup %2741  ;;  %v1861_v11 = vld [vmem:[#allocation5 + $0x68] sm:$0xff] }
 0x63b   :  { %2745 = vrcp.f32 %v1479_v29  ;;  %v2744_v38 = vpop.eup %2743  ;;  %v1860_v29 = vld [vmem:[#allocation5 + $0x60] sm:$0xff] }
 0x63c   :  { %2747 = vrcp.f32 %v1480_v31  ;;  %v1481_v46 = vadd.f32 1.0, %v2744_v38  ;;  %v2579_v31 = vpack.c.bf16 %v1861_v11, %v1860_v29  ;;  %v1863_v38 = vld [vmem:[#allocation5 + $0x78] sm:$0xff] }
 0x63e   :  { %2749 = vrcp.f32 %v1481_v46 }
 0x645   :  { %v2746_v39 = vpop.eup %2745 }
 0x646   :  { %v1490_v42 = vmul.f32 %v2746_v39, %v2742_v33  ;;  %v2748_v43 = vpop.eup %2747  ;;  %v1862_v33 = vld [vmem:[#allocation5 + $0x70] sm:$0xff] }
 0x647   :  { %v1489_v47 = vmul.f32 %v2748_v43, %v3288_v55  ;;  %v1850_v55 = vld [vmem:[#allocation5 + $0x10] sm:$0xff]  ;;  %v2582_v39 = vpack.c.bf16 %v1863_v38, %v1862_v33 }
 0x648   :  { %v2750_v51 = vpop.eup %2749  ;;  %v2564_v9 = vpack.c.bf16 %v1851_v5, %v1850_v55 }
 0x649   :  { %v3330_v50 = vadd.f32 %v1490_v42, %v1489_v47 }
 0x64b   :  { %2751 = vtanh.f32 %v3330_v50 }
 0x655   :  { %v2752_v52 = vpop.eup %2751 }
 0x656   :  { %v1493_v3 = vmul.f32 %v2752_v52, %v2750_v51 }
 0x658   :  { %1566 = vmatmul.mubr.f32.vlgmr.msra.gmra.mrb[12].mxu0 %v1493_v3  ;;  %1637 = vmatmul.mubr.f32.vlgmr.msra.gmra.mrb[12].mxu1 %v1493_v3 }
 0x659   :  { %2499 = vmatpush1.bf16.msra.mxu0 %v2924_v15  ;;  %2531 = vmatpush1.bf16.msra.mxu1 %v2933_v19 }
 0x65a   :  { %2501 = vmatprep.subr.bf16.mxu0 %v2936_v23  ;;  %2533 = vmatprep.subr.bf16.mxu1 %v2938_v24 }
 0x65b   :  { %1742 = vmatprep.mubr.f32.mxu0 %v2839_v0  ;;  %1813 = vmatprep.mubr.f32.mxu1 %v2839_v0 }
 0x65d   :  { %2503 = vmatpush1.bf16.msra.mxu0 %v2942_v28  ;;  %2535 = vmatpush1.bf16.msra.mxu1 %v2949_v32 }
 0x65e   :  { %2505 = vmatprep.subr.bf16.mxu0 %v2953_v36  ;;  %2537 = vmatprep.subr.bf16.mxu1 %v2955_v37 }
 0x661   :  { %2507 = vmatpush1.bf16.msra.mxu0 %v2959_v41  ;;  %2539 = vmatpush1.bf16.msra.mxu1 %v2966_v45 }
 0x662   :  { %2509 = vmatprep.subr.bf16.mxu0 %v2970_v49  ;;  %2541 = vmatprep.subr.bf16.mxu1 %v2974_v53 }
 0x665   :  { %2511 = vmatpush1.bf16.msra.mxu0 %v2978_v56  ;;  %2543 = vmatpush1.bf16.msra.mxu1 %v2982_v60 }
 0x666   :  { %2513 = vmatprep.subr.bf16.mxu0 %v2989_v1  ;;  %2545 = vmatprep.subr.bf16.mxu1 %v2993_v4 }
 0x669   :  { %2515 = vmatpush1.bf16.msra.mxu0 %v2997_v7  ;;  %2547 = vmatpush1.bf16.msra.mxu1 %v3001_v12 }
 0x66a   :  { %2517 = vmatprep.subr.bf16.mxu0 %v3008_v17  ;;  %2549 = vmatprep.subr.bf16.mxu1 %v3012_v21 }
 0x66d   :  { %2519 = vmatpush1.bf16.msra.mxu0 %v3016_v26  ;;  %2551 = vmatpush1.bf16.msra.mxu1 %v3020_v30 }
 0x66e   :  { %2521 = vmatprep.subr.bf16.mxu0 %v3027_v35  ;;  %2553 = vmatprep.subr.bf16.mxu1 %v3031_v40 }
 0x671   :  { %2523 = vmatpush1.bf16.msra.mxu0 %v3035_v44  ;;  %2555 = vmatpush1.bf16.msra.mxu1 %v3039_v48 }
 0x672   :  { %2525 = vmatprep.subr.bf16.mxu0 %v3046_v54  ;;  %2557 = vmatprep.subr.bf16.mxu1 %v3050_v58  ;;  %v1848_v54 = vld [vmem:[#allocation5] sm:$0xff]  ;;  %v1849_v58 = vld [vmem:[#allocation5 + $0x8] sm:$0xff] }
 0x675   :  { %2527 = vmatpush1.bf16.msra.mxu0 %v3054_v59  ;;  %2559 = vmatpush1.bf16.msra.mxu1 %v3058_v61  ;;  %v2561_v59 = vpack.c.bf16 %v1849_v58, %v1848_v54  ;;  %v2840_v61 = vmov 0.0|0.0  }
 0x676   :  { %2560 = vmatprep.subr.bf16.mxu0 %v2840_v61 }
 0x72b   :  { %v1567_v15 = vpop.f32.mrb[12].mxu0  ;;  %v1638_v19 = vpop.f32.mrb[12].mxu1 }
 0x72c   :  { %v2596_v23 = vadd.f32 %v1567_v15, %v3108_v6  ;;  %v1569_v24 = vpop.f32.mrb[13].mxu0  ;;  %v1640_v28 = vpop.f32.mrb[13].mxu1  ;;  %v2612_v41 = vadd.f32 %v1638_v19, %v3114_v27 }
 0x72d   :  { %v2597_v32 = vadd.f32 %v1569_v24, %v3110_v8  ;;  %v2613_v45 = vadd.f32 %v1640_v28, %v3117_v34 }
 0x72e   :  { %v1989_v36 = vmul.f32 -1.442695, %v2596_v23  ;;  %v1991_v49 = vmul.f32 -1.442695, %v2612_v41 }
 0x72f   :  { %v1990_v37 = vmul.f32 -1.442695, %v2597_v32 }
 0x730   :  { %2753 = vpow2.f32 %v1989_v36 }
 0x731   :  { %2755 = vpow2.f32 %v1990_v37 }
 0x732   :  { %2757 = vtanh.f32 %v2613_v45 }
 0x733   :  { %2759 = vpow2.f32 %v1991_v49 }
 0x73a   :  { %v2754_v53 = vpop.eup %2753 }
 0x73b   :  { %v1656_v56 = vadd.f32 1.0, %v2754_v53  ;;  %v2756_v60 = vpop.eup %2755 }
 0x73c   :  { %v1657_v1 = vadd.f32 1.0, %v2756_v60  ;;  %v2758_v4 = vpop.eup %2757  ;;  %v1995_v60 = vld [vmem:[%s3390_s5] ss:$0 sm:$0xff] }
 0x73d   :  { %2761 = vrcp.f32 %v1656_v56  ;;  %v2760_v7 = vpop.eup %2759 }
 0x73e   :  { %2763 = vrcp.f32 %v1657_v1  ;;  %v1658_v26 = vadd.f32 1.0, %v2760_v7 }
 0x740   :  { %2765 = vrcp.f32 %v1658_v26 }
 0x747   :  { %v2762_v12 = vpop.eup %2761 }
 0x748   :  { %v1667_v17 = vmul.f32 %v2762_v12, %v2758_v4  ;;  %v2764_v21 = vpop.eup %2763 }
 0x749   :  { %v1666_v30 = vmul.f32 %v2764_v21, %v3330_v50 }
 0x74a   :  { %v2766_v40 = vpop.eup %2765 }
 0x74b   :  { %v3370_v35 = vadd.f32 %v1667_v17, %v1666_v30 }
 0x74d   :  { %2767 = vtanh.f32 %v3370_v35 }
 0x757   :  { %v2768_v44 = vpop.eup %2767 }
 0x758   :  { %v1670_v48 = vmul.f32 %v2768_v44, %v2766_v40 }
 0x75a   :  { %1743 = vmatmul.mubr.f32.vlgmr.msra.gmra.mrb[14].mxu0 %v1670_v48  ;;  %1814 = vmatmul.mubr.f32.vlgmr.msra.gmra.mrb[14].mxu1 %v1670_v48 }
 0x75b   :  { %2562 = vmatpush3.bf16.msra.mxu0 %v2561_v59  ;;  %2045 = vmatprep.mubr.msk.f32.mxu0 %vm2841_vm1, %v2839_v0 }
 0x75c   :  { %2563 = vmatprep.subr.bf16.mxu0 %v2840_v61 }
 0x75f   :  { %2565 = vmatpush3.bf16.msra.mxu0 %v2564_v9 }
 0x760   :  { %2566 = vmatprep.subr.bf16.mxu0 %v2840_v61 }
 0x763   :  { %2568 = vmatpush3.bf16.msra.mxu0 %v2567_v63 }
 0x764   :  { %2569 = vmatprep.subr.bf16.mxu0 %v2840_v61 }
 0x767   :  { %2571 = vmatpush3.bf16.msra.mxu0 %v2570_v14 }
 0x768   :  { %2572 = vmatprep.subr.bf16.mxu0 %v2840_v61 }
 0x76b   :  { %2574 = vmatpush3.bf16.msra.mxu0 %v2573_v20 }
 0x76c   :  { %2575 = vmatprep.subr.bf16.mxu0 %v2840_v61 }
 0x76f   :  { %2577 = vmatpush3.bf16.msra.mxu0 %v2576_v10 }
 0x770   :  { %2578 = vmatprep.subr.bf16.mxu0 %v2840_v61 }
 0x773   :  { %2580 = vmatpush3.bf16.msra.mxu0 %v2579_v31 }
 0x774   :  { %2581 = vmatprep.subr.bf16.mxu0 %v2840_v61 }
 0x777   :  { %2583 = vmatpush3.bf16.msra.mxu0 %v2582_v39 }
 0x82d   :  { %v1744_v42 = vpop.f32.mrb[14].mxu0  ;;  %v1815_v43 = vpop.f32.mrb[14].mxu1 }
 0x82e   :  { %v2598_v46 = vadd.f32 %v1744_v42, %v3108_v6  ;;  %v1746_v47 = vpop.f32.mrb[15].mxu0  ;;  %v1817_v50 = vpop.f32.mrb[15].mxu1  ;;  %v2614_v0 = vadd.f32 %v1815_v43, %v3114_v27 }
 0x82f   :  { %v2599_v51 = vadd.f32 %v1746_v47, %v3110_v8  ;;  %v2615_v15 = vadd.f32 %v1817_v50, %v3117_v34 }
 0x830   :  { %v1992_v52 = vmul.f32 -1.442695, %v2598_v46  ;;  %v1994_v19 = vmul.f32 -1.442695, %v2614_v0 }
 0x831   :  { %v1993_v3 = vmul.f32 -1.442695, %v2599_v51 }
 0x832   :  { %2769 = vpow2.f32 %v1992_v52 }
 0x833   :  { %2771 = vpow2.f32 %v1993_v3 }
 0x834   :  { %2773 = vtanh.f32 %v2615_v15 }
 0x835   :  { %2775 = vpow2.f32 %v1994_v19 }
 0x83c   :  { %v2770_v23 = vpop.eup %2769 }
 0x83d   :  { %v1833_v24 = vadd.f32 1.0, %v2770_v23  ;;  %v2772_v28 = vpop.eup %2771 }
 0x83e   :  { %v1834_v6 = vadd.f32 1.0, %v2772_v28  ;;  %v2774_v32 = vpop.eup %2773 }
 0x83f   :  { %2777 = vrcp.f32 %v1833_v24  ;;  %v2776_v36 = vpop.eup %2775 }
 0x840   :  { %2779 = vrcp.f32 %v1834_v6  ;;  %v1835_v45 = vadd.f32 1.0, %v2776_v36 }
 0x842   :  { %2781 = vrcp.f32 %v1835_v45 }
 0x849   :  { %v2778_v8 = vpop.eup %2777 }
 0x84a   :  { %v1844_v37 = vmul.f32 %v2778_v8, %v2774_v32  ;;  %v2780_v41 = vpop.eup %2779 }
 0x84b   :  { %v1843_v49 = vmul.f32 %v2780_v41, %v3370_v35 }
 0x84c   :  { %v2782_v34 = vpop.eup %2781 }
 0x84d   :  { %v1845_v27 = vadd.f32 %v1844_v37, %v1843_v49 }
 0x84f   :  { %2783 = vtanh.f32 %v1845_v27 }
 0x859   :  { %v2784_v53 = vpop.eup %2783 }
 0x85a   :  { %v1847_v56 = vmul.f32 %v2784_v53, %v2782_v34 }
 0x85c   :  { %2046 = vmatmul.mubr.f32.vlgmr.msra.gmra.mrb[16].mxu0 %v1847_v56 }
 0x92f   :  { %v1937_v1 = vpop.f32.mrb[16].mxu0 }
 0x930   :  { %v1938_v4 = vadd.f32 %v1995_v60, %v1937_v1  ;;  %v2047_v7 = vpop.f32.mrb[17].mxu0 }
 0x932   :  { %1941 = vst [vmem:[%s3391_s6] sm:$0xff] %v1938_v4 }
 0x933   :  { %1946 = vsyncpa [#allocation4], 1 }
 0x934   :  { %1947 = vsyncpa [#allocation6], 1 }

</bundles_post_ra>
